<compile_context>
chip_gen: v6e
topology: v6e:2x2x1
jax: 0.10.0
libtpu: 0.0.40
codegen_flags: <defaults>
</compile_context>

<pallas_src>
import math
import functools

import jax
import jax.numpy as jnp
from jax.experimental import pallas as pl
from jax.experimental.pallas import tpu as pltpu


# ----------------------------- fused decoder kernel -------------------------

def _decoder_kernel(
    # inputs (whole-array VMEM blocks; layer-stacked params select block `l`)
    x_emb_ref, pe_ref, mem_ref, dec_w_ref, dec_b_ref,
    sa_wqkv_ref, sa_bqkv_ref, sa_wo_ref, sa_bo_ref,
    ca_wq_ref, ca_bq_ref, ca_wkv_ref, ca_bkv_ref, ca_wo_ref, ca_bo_ref,
    ff1_w_ref, ff1_b_ref, ff2_w_ref, ff2_b_ref,
    ln_g_ref, ln_b_ref,
    # output
    out_ref,
    # scratch: activations resident in VMEM across the layer grid axis
    x_scr,
    *, nhead, emb_scale):
    layer = pl.program_id(0)
    B, S, E = x_scr.shape
    T = mem_ref.shape[1]
    Dh = E // nhead
    scale = 1.0 / math.sqrt(Dh)

    # ---- first grid step: embedding scale + positional encoding ------------
    # TODO(synk): dropout (pos + decoder layers) treated as identity (eval mode).
    @pl.when(layer == 0)
    def _init():
        x_scr[...] = x_emb_ref[...] * emb_scale + pe_ref[...][None, :, :]

    x2 = x_scr[...].reshape(B * S, E)          # (B*S, E)
    mem2 = mem_ref[...].reshape(B * T, E)      # (B*T, E)

    def dense(y, w_ref, b_ref, relu=False):
        out = jnp.dot(y, w_ref[0], preferred_element_type=jnp.float32) + b_ref[0]
        return jnp.maximum(out, 0.0) if relu else out

    def layernorm(y, idx):
        g = ln_g_ref[...][:, idx, :]           # (1, E)
        b = ln_b_ref[...][:, idx, :]
        mu = jnp.mean(y, axis=-1, keepdims=True)
        var = jnp.mean(jnp.square(y - mu), axis=-1, keepdims=True)
        return (y - mu) * jax.lax.rsqrt(var + 1e-5) * g + b

    def attention(q2, k2, v2, Sq, Tk, wo_ref, bo_ref, causal):
        # q2: (B*Sq, E), k2/v2: (B*Tk, E); heads split / merged in-register.
        q3 = q2.reshape(B, Sq, E)
        k3 = k2.reshape(B, Tk, E)
        v3 = v2.reshape(B, Tk, E)
        wo = wo_ref[0]                          # (E, E)
        if causal:
            row = jax.lax.broadcasted_iota(jnp.int32, (Sq, Tk), 0)
            col = jax.lax.broadcasted_iota(jnp.int32, (Sq, Tk), 1)
            bias = jnp.where(col <= row, 0.0, -1e9).astype(jnp.float32)[None, :, :]
        o2 = jnp.zeros((B * Sq, E), jnp.float32)
        for h in range(nhead):                  # small static unroll
            sl = slice(h * Dh, (h + 1) * Dh)
            s = jnp.einsum("bqd,bkd->bqk", q3[:, :, sl], k3[:, :, sl],
                           preferred_element_type=jnp.float32) * scale
            if causal:
                s = s + bias
            m = jnp.max(s, axis=-1, keepdims=True)
            p = jnp.exp(s - m)
            p = p * pl.reciprocal(jnp.sum(p, axis=-1, keepdims=True), approx=True)
            oh = jnp.einsum("bqk,bkd->bqd", p, v3[:, :, sl],
                            preferred_element_type=jnp.float32)   # (B, Sq, Dh)
            # head-merge + output projection folded: concat_h(o_h) @ Wo
            #   == sum_h o_h @ Wo[h*Dh:(h+1)*Dh, :]
            o2 = o2 + jnp.dot(oh.reshape(B * Sq, Dh), wo[sl, :],
                              preferred_element_type=jnp.float32)
        return o2 + bo_ref[0]

    # ---- self-attention block (fused QKV projection), post-norm ------------
    qkv = dense(x2, sa_wqkv_ref, sa_bqkv_ref)                     # (B*S, 3E)
    sa = attention(qkv[:, :E], qkv[:, E:2 * E], qkv[:, 2 * E:], S, S,
                   sa_wo_ref, sa_bo_ref, causal=True)
    x2 = layernorm(x2 + sa, 0)

    # ---- cross-attention block (fused KV projection of memory) -------------
    q2 = dense(x2, ca_wq_ref, ca_bq_ref)                          # (B*S, E)
    kv = dense(mem2, ca_wkv_ref, ca_bkv_ref)                      # (B*T, 2E)
    ca = attention(q2, kv[:, :E], kv[:, E:], S, T,
                   ca_wo_ref, ca_bo_ref, causal=False)
    x2 = layernorm(x2 + ca, 1)

    # ---- feed-forward block -------------------------------------------------
    h = dense(x2, ff1_w_ref, ff1_b_ref, relu=True)
    h = dense(h, ff2_w_ref, ff2_b_ref)
    x2 = layernorm(x2 + h, 2)

    x_scr[...] = x2.reshape(B, S, E)

    # ---- last grid step: lane-dense vocab projection (vocab padded to 128) --
    @pl.when(layer == pl.num_programs(0) - 1)
    def _final():
        logits = jnp.dot(x2, dec_w_ref[...],
                         preferred_element_type=jnp.float32) + dec_b_ref[...]
        out_ref[...] = logits.reshape(B, S, -1)


# ------------------------------- wrapper -------------------------------------

_STACKED = ("sa_wqkv", "sa_bqkv", "sa_wo", "sa_bo",
            "ca_wq", "ca_bq", "ca_wkv", "ca_bkv", "ca_wo", "ca_bo",
            "ff1_w", "ff1_b", "ff2_w", "ff2_b", "ln_g", "ln_b")


@functools.partial(jax.jit, static_argnames=("nhead",))
def decoder_forward(params, src, memory, *, nhead):
    # src: (batch, seq) int32 tokens; memory: (mem_len, batch, emb) float32
    B, S = src.shape
    E = params["embed"].shape[1]
    vocab = params["decode_w"].shape[1]
    T = memory.shape[0]
    L = params["sa_wqkv"].shape[0]
    vpad = pl.cdiv(vocab, 128) * 128

    # XLA-side glue only: embedding gather, one memory transpose, vocab pad.
    x_emb = params["embed"][src]                     # (B, S, E)
    pe = params["pe"][:S]                            # (S, E)
    mem_b = jnp.transpose(memory, (1, 0, 2))         # (B, T, E)
    dec_w = jnp.pad(params["decode_w"], ((0, 0), (0, vpad - vocab)))
    dec_b = jnp.pad(params["decode_b"], ((0, 0), (0, vpad - vocab)))

    stacked = [params[name] for name in _STACKED]

    fixed3 = lambda l: (0, 0, 0)
    fixed2 = lambda l: (0, 0)
    per_layer = lambda l: (l, 0, 0)

    in_specs = [
        pl.BlockSpec((B, S, E), fixed3),             # x_emb
        pl.BlockSpec((S, E), fixed2),                # pe
        pl.BlockSpec((B, T, E), fixed3),             # memory (batch-first)
        pl.BlockSpec((E, vpad), fixed2),             # decode_w (padded)
        pl.BlockSpec((1, vpad), fixed2),             # decode_b (padded)
    ] + [pl.BlockSpec((1,) + p.shape[1:], per_layer) for p in stacked]

    out = pl.pallas_call(
        functools.partial(_decoder_kernel, nhead=nhead, emb_scale=math.sqrt(E)),
        out_shape=jax.ShapeDtypeStruct((B, S, vpad), jnp.float32),
        grid=(L,),
        in_specs=in_specs,
        out_specs=pl.BlockSpec((B, S, vpad), fixed3),
        scratch_shapes=[pltpu.VMEM((B, S, E), jnp.float32)],
        compiler_params=pltpu.CompilerParams(
            dimension_semantics=("arbitrary",)),     # layer axis is sequential
    )(x_emb, pe, mem_b, dec_w, dec_b, *stacked)

    out = out[:, :, :vocab]                          # drop vocab padding
    return jnp.transpose(out, (1, 0, 2))             # (S, B, vocab) PyTorch layout


# ------------------------------- init ----------------------------------------

def make_pe(max_len, d_model):
    position = jnp.arange(max_len, dtype=jnp.float32)[:, None]
    div_term = jnp.exp(jnp.arange(0, d_model, 2, dtype=jnp.float32)
                       * (-math.log(10000.0) / d_model))
    pe = jnp.zeros((max_len, d_model), jnp.float32)
    pe = pe.at[:, 0::2].set(jnp.sin(position * div_term))
    pe = pe.at[:, 1::2].set(jnp.cos(position * div_term))
    return pe                                        # (max_len, d_model)


def _xavier(key, shape):
    limit = math.sqrt(6.0 / (shape[-2] + shape[-1]))
    return jax.random.uniform(key, shape, jnp.float32, -limit, limit)


def init_params(key, vocab, emb, nhid, nlayers, max_len=5000):
    keys = jax.random.split(key, 9)
    L = nlayers
    return {
        "embed": jax.random.normal(keys[0], (vocab, emb), jnp.float32),
        "decode_w": jax.random.uniform(keys[1], (emb, vocab), jnp.float32, -0.1, 0.1),
        "decode_b": jnp.zeros((1, vocab), jnp.float32),
        "pe": make_pe(max_len, emb),
        # layer-stacked params (leading dim = layer); weights pre-transposed
        # so the kernel computes x @ W (== x @ W_pt^T).
        "sa_wqkv": _xavier(keys[2], (L, emb, 3 * emb)),
        "sa_bqkv": jnp.zeros((L, 1, 3 * emb), jnp.float32),
        "sa_wo": _xavier(keys[3], (L, emb, emb)),
        "sa_bo": jnp.zeros((L, 1, emb), jnp.float32),
        "ca_wq": _xavier(keys[4], (L, emb, emb)),
        "ca_bq": jnp.zeros((L, 1, emb), jnp.float32),
        "ca_wkv": _xavier(keys[5], (L, emb, 2 * emb)),
        "ca_bkv": jnp.zeros((L, 1, 2 * emb), jnp.float32),
        "ca_wo": _xavier(keys[6], (L, emb, emb)),
        "ca_bo": jnp.zeros((L, 1, emb), jnp.float32),
        "ff1_w": _xavier(keys[7], (L, emb, nhid)),
        "ff1_b": jnp.zeros((L, 1, nhid), jnp.float32),
        "ff2_w": _xavier(keys[8], (L, nhid, emb)),
        "ff2_b": jnp.zeros((L, 1, emb), jnp.float32),
        "ln_g": jnp.ones((L, 3, emb), jnp.float32),
        "ln_b": jnp.zeros((L, 3, emb), jnp.float32),
    }


# ------------------------------- main -----------------------------------------

if __name__ == "__main__":
    vocab_size, emb_size, n_head, n_hid, n_layers = 50, 32, 4, 64, 2
    batch, seq_len, mem_len = 2, 8, 8

    root = jax.random.PRNGKey(0)
    k_params, k_src, k_mem = jax.random.split(root, 3)

    params = init_params(k_params, vocab_size, emb_size, n_hid, n_layers)
    src = jax.random.randint(k_src, (batch, seq_len), 0, vocab_size, dtype=jnp.int32)
    memory = jax.random.normal(k_mem, (mem_len, batch, emb_size), jnp.float32)

    out = decoder_forward(params, src, memory, nhead=n_head)
    out = jax.block_until_ready(out)

    assert out.shape == (seq_len, batch, vocab_size), out.shape
    assert bool(jnp.all(jnp.isfinite(out)))
    print("KERNEL_OK")
</pallas_src>

<mosaic_0001>
module attributes {stable_mosaic.version = 11 : i64} {
  func.func @_decoder_kernel(%arg0: i32, %arg1: memref<2x8x32xf32, #tpu.memory_space<vmem>>, %arg2: memref<8x32xf32, #tpu.memory_space<vmem>>, %arg3: memref<2x8x32xf32, #tpu.memory_space<vmem>>, %arg4: memref<32x128xf32, #tpu.memory_space<vmem>>, %arg5: memref<1x128xf32, #tpu.memory_space<vmem>>, %arg6: memref<1x32x96xf32, #tpu.memory_space<vmem>>, %arg7: memref<1x1x96xf32, #tpu.memory_space<vmem>>, %arg8: memref<1x32x32xf32, #tpu.memory_space<vmem>>, %arg9: memref<1x1x32xf32, #tpu.memory_space<vmem>>, %arg10: memref<1x32x32xf32, #tpu.memory_space<vmem>>, %arg11: memref<1x1x32xf32, #tpu.memory_space<vmem>>, %arg12: memref<1x32x64xf32, #tpu.memory_space<vmem>>, %arg13: memref<1x1x64xf32, #tpu.memory_space<vmem>>, %arg14: memref<1x32x32xf32, #tpu.memory_space<vmem>>, %arg15: memref<1x1x32xf32, #tpu.memory_space<vmem>>, %arg16: memref<1x32x64xf32, #tpu.memory_space<vmem>>, %arg17: memref<1x1x64xf32, #tpu.memory_space<vmem>>, %arg18: memref<1x64x32xf32, #tpu.memory_space<vmem>>, %arg19: memref<1x1x32xf32, #tpu.memory_space<vmem>>, %arg20: memref<1x3x32xf32, #tpu.memory_space<vmem>>, %arg21: memref<1x3x32xf32, #tpu.memory_space<vmem>>, %arg22: memref<2x8x128xf32, #tpu.memory_space<vmem>>, %arg23: memref<2x8x32xf32, #tpu.memory_space<vmem>>) attributes {dimension_semantics = [#tpu.dimension_semantics<arbitrary>], iteration_bounds = array<i64: 2>, scalar_prefetch = 0 : i64, scratch_operands = 1 : i64, tpu.core_type = #tpu.core_type<tc>, window_params = [{pipeline_mode = #tpu.pipeline_mode<synchronous>, transform_indices = @transform_0, window_bounds = array<i64: 2, 8, 32>}, {pipeline_mode = #tpu.pipeline_mode<synchronous>, transform_indices = @transform_1, window_bounds = array<i64: 8, 32>}, {pipeline_mode = #tpu.pipeline_mode<synchronous>, transform_indices = @transform_2, window_bounds = array<i64: 2, 8, 32>}, {pipeline_mode = #tpu.pipeline_mode<synchronous>, transform_indices = @transform_3, window_bounds = array<i64: 32, 128>}, {pipeline_mode = #tpu.pipeline_mode<synchronous>, transform_indices = @transform_4, window_bounds = array<i64: 1, 128>}, {transform_indices = @transform_5, window_bounds = array<i64: 1, 32, 96>}, {transform_indices = @transform_6, window_bounds = array<i64: 1, 1, 96>}, {transform_indices = @transform_7, window_bounds = array<i64: 1, 32, 32>}, {transform_indices = @transform_8, window_bounds = array<i64: 1, 1, 32>}, {transform_indices = @transform_9, window_bounds = array<i64: 1, 32, 32>}, {transform_indices = @transform_10, window_bounds = array<i64: 1, 1, 32>}, {transform_indices = @transform_11, window_bounds = array<i64: 1, 32, 64>}, {transform_indices = @transform_12, window_bounds = array<i64: 1, 1, 64>}, {transform_indices = @transform_13, window_bounds = array<i64: 1, 32, 32>}, {transform_indices = @transform_14, window_bounds = array<i64: 1, 1, 32>}, {transform_indices = @transform_15, window_bounds = array<i64: 1, 32, 64>}, {transform_indices = @transform_16, window_bounds = array<i64: 1, 1, 64>}, {transform_indices = @transform_17, window_bounds = array<i64: 1, 64, 32>}, {transform_indices = @transform_18, window_bounds = array<i64: 1, 1, 32>}, {transform_indices = @transform_19, window_bounds = array<i64: 1, 3, 32>}, {transform_indices = @transform_20, window_bounds = array<i64: 1, 3, 32>}, {pipeline_mode = #tpu.pipeline_mode<synchronous>, transform_indices = @transform_21, window_bounds = array<i64: 2, 8, 128>}]} {
    %c0_i32 = arith.constant 0 : i32
    %0 = arith.cmpi eq, %arg0, %c0_i32 : i32
    %1 = arith.extui %0 : i1 to i32
    %c0_i32_0 = arith.constant 0 : i32
    %2 = arith.cmpi ne, %1, %c0_i32_0 : i32
    scf.if %2 {
      %c0_142 = arith.constant 0 : index
      %c0_143 = arith.constant 0 : index
      %c0_144 = arith.constant 0 : index
      %344 = vector.load %arg1[%c0_142, %c0_143, %c0_144] : memref<2x8x32xf32, #tpu.memory_space<vmem>>, vector<2x8x32xf32>
      %cst_145 = arith.constant 5.65685415 : f32
      %345 = vector.broadcast %cst_145 : f32 to vector<2x8x32xf32>
      %346 = arith.mulf %344, %345 : vector<2x8x32xf32>
      %c0_146 = arith.constant 0 : index
      %c0_147 = arith.constant 0 : index
      %347 = vector.load %arg2[%c0_146, %c0_147] : memref<8x32xf32, #tpu.memory_space<vmem>>, vector<8x32xf32>
      %348 = vector.shape_cast %347 : vector<8x32xf32> to vector<1x8x32xf32>
      %349 = vector.broadcast %348 : vector<1x8x32xf32> to vector<2x8x32xf32>
      %350 = arith.addf %346, %349 : vector<2x8x32xf32>
      %c0_148 = arith.constant 0 : index
      %c0_149 = arith.constant 0 : index
      %c0_150 = arith.constant 0 : index
      %351 = vector.load %arg23[%c0_148, %c0_149, %c0_150] : memref<2x8x32xf32, #tpu.memory_space<vmem>>, vector<2x8x32xf32>
      tpu.vector_store %arg23[%c0_148, %c0_149, %c0_150], %350 {strides = array<i32>} : memref<2x8x32xf32, #tpu.memory_space<vmem>>, vector<2x8x32xf32>,
    } else {
    }
    %c0 = arith.constant 0 : index
    %c0_1 = arith.constant 0 : index
    %c0_2 = arith.constant 0 : index
    %3 = vector.load %arg23[%c0, %c0_1, %c0_2] : memref<2x8x32xf32, #tpu.memory_space<vmem>>, vector<2x8x32xf32>
    %4 = vector.shape_cast %3 : vector<2x8x32xf32> to vector<16x32xf32>
    %c0_3 = arith.constant 0 : index
    %c0_4 = arith.constant 0 : index
    %c0_5 = arith.constant 0 : index
    %5 = vector.load %arg3[%c0_3, %c0_4, %c0_5] : memref<2x8x32xf32, #tpu.memory_space<vmem>>, vector<2x8x32xf32>
    %6 = vector.shape_cast %5 : vector<2x8x32xf32> to vector<16x32xf32>
    %c0_6 = arith.constant 0 : index
    %c0_7 = arith.constant 0 : index
    %c0_8 = arith.constant 0 : index
    %7 = vector.load %arg6[%c0_6, %c0_7, %c0_8] : memref<1x32x96xf32, #tpu.memory_space<vmem>>, vector<1x32x96xf32>
    %8 = vector.shape_cast %7 : vector<1x32x96xf32> to vector<32x96xf32>
    %cst = arith.constant dense<0.000000e+00> : vector<16x96xf32>
    %9 = tpu.matmul %4, %8, %cst {dimension_numbers = #tpu.dot_dimension_numbers<[1], [0], [0], [1], [0, 0, 1, 1], [], []>} : vector<16x32xf32>, vector<32x96xf32>, vector<16x96xf32> -> vector<16x96xf32>
    %c0_9 = arith.constant 0 : index
    %c0_10 = arith.constant 0 : index
    %c0_11 = arith.constant 0 : index
    %10 = vector.load %arg7[%c0_9, %c0_10, %c0_11] : memref<1x1x96xf32, #tpu.memory_space<vmem>>, vector<1x1x96xf32>
    %11 = vector.shape_cast %10 : vector<1x1x96xf32> to vector<1x96xf32>
    %12 = vector.broadcast %11 : vector<1x96xf32> to vector<16x96xf32>
    %13 = arith.addf %9, %12 : vector<16x96xf32>
    %14 = vector.extract_strided_slice %13 {offsets = [0, 0], sizes = [16, 32], strides = [1, 1]} : vector<16x96xf32> to vector<16x32xf32>
    %15 = vector.extract_strided_slice %13 {offsets = [0, 32], sizes = [16, 32], strides = [1, 1]} : vector<16x96xf32> to vector<16x32xf32>
    %16 = vector.extract_strided_slice %13 {offsets = [0, 64], sizes = [16, 32], strides = [1, 1]} : vector<16x96xf32> to vector<16x32xf32>
    %17 = vector.shape_cast %14 : vector<16x32xf32> to vector<2x8x32xf32>
    %18 = vector.shape_cast %15 : vector<16x32xf32> to vector<2x8x32xf32>
    %19 = vector.shape_cast %16 : vector<16x32xf32> to vector<2x8x32xf32>
    %c0_12 = arith.constant 0 : index
    %c0_13 = arith.constant 0 : index
    %c0_14 = arith.constant 0 : index
    %20 = vector.load %arg8[%c0_12, %c0_13, %c0_14] : memref<1x32x32xf32, #tpu.memory_space<vmem>>, vector<1x32x32xf32>
    %21 = vector.shape_cast %20 : vector<1x32x32xf32> to vector<32x32xf32>
    %22 = tpu.iota {dimensions = array<i32: 0>} : vector<8x8xi32>
    %23 = tpu.iota {dimensions = array<i32: 1>} : vector<8x8xi32>
    %24 = arith.cmpi sle, %23, %22 : vector<8x8xi32>
    %cst_15 = arith.constant 0.000000e+00 : f32
    %cst_16 = arith.constant -1.000000e+09 : f32
    %25 = vector.broadcast %cst_15 : f32 to vector<8x8xf32>
    %26 = vector.broadcast %cst_16 : f32 to vector<8x8xf32>
    %27 = arith.select %24, %25, %26 : vector<8x8xi1>, vector<8x8xf32>
    %28 = vector.shape_cast %27 : vector<8x8xf32> to vector<1x8x8xf32>
    %cst_17 = arith.constant 0.000000e+00 : f32
    %29 = vector.broadcast %cst_17 : f32 to vector<16x32xf32>
    %30 = vector.extract_strided_slice %17 {offsets = [0, 0, 0], sizes = [2, 8, 8], strides = [1, 1, 1]} : vector<2x8x32xf32> to vector<2x8x8xf32>
    %31 = vector.extract_strided_slice %18 {offsets = [0, 0, 0], sizes = [2, 8, 8], strides = [1, 1, 1]} : vector<2x8x32xf32> to vector<2x8x8xf32>
    "tpu.trace_start"() <{level = 10 : i32, message = "bqd,bkd->bqk"}> : () -> ()
    %cst_18 = arith.constant dense<0.000000e+00> : vector<2x8x8xf32>
    %32 = tpu.matmul %30, %31, %cst_18 {dimension_numbers = #tpu.dot_dimension_numbers<[2], [2], [1], [1], [0, 0, 0, 1, 1, 1], [0], [0]>} : vector<2x8x8xf32>, vector<2x8x8xf32>, vector<2x8x8xf32> -> vector<2x8x8xf32>
    "tpu.trace_stop"() : () -> ()
    %cst_19 = arith.constant 0.353553385 : f32
    %33 = vector.broadcast %cst_19 : f32 to vector<2x8x8xf32>
    %34 = arith.mulf %32, %33 : vector<2x8x8xf32>
    %35 = vector.broadcast %28 : vector<1x8x8xf32> to vector<2x8x8xf32>
    %36 = arith.addf %34, %35 : vector<2x8x8xf32>
    %cst_20 = arith.constant dense<0xFF800000> : vector<2x8xf32>
    %37 = vector.multi_reduction <maximumf>, %36, %cst_20 [2] : vector<2x8x8xf32> to vector<2x8xf32>
    %38 = vector.shape_cast %37 : vector<2x8xf32> to vector<2x8x1xf32>
    %39 = vector.broadcast %38 : vector<2x8x1xf32> to vector<2x8x8xf32>
    %40 = arith.subf %36, %39 : vector<2x8x8xf32>
    %41 = math.exp %40 : vector<2x8x8xf32>
    %cst_21 = arith.constant dense<0.000000e+00> : vector<2x8xf32>
    %42 = vector.multi_reduction <add>, %41, %cst_21 [2] : vector<2x8x8xf32> to vector<2x8xf32>
    %43 = vector.shape_cast %42 : vector<2x8xf32> to vector<2x8x1xf32>
    %44 = tpu.reciprocal %43 {approx = true} : vector<2x8x1xf32> -> vector<2x8x1xf32>
    %45 = vector.broadcast %44 : vector<2x8x1xf32> to vector<2x8x8xf32>
    %46 = arith.mulf %41, %45 : vector<2x8x8xf32>
    %47 = vector.extract_strided_slice %19 {offsets = [0, 0, 0], sizes = [2, 8, 8], strides = [1, 1, 1]} : vector<2x8x32xf32> to vector<2x8x8xf32>
    "tpu.trace_start"() <{level = 10 : i32, message = "bqk,bkd->bqd"}> : () -> ()
    %cst_22 = arith.constant dense<0.000000e+00> : vector<2x8x8xf32>
    %48 = tpu.matmul %46, %47, %cst_22 {dimension_numbers = #tpu.dot_dimension_numbers<[2], [1], [1], [2], [0, 0, 0, 1, 1, 2], [0], [0]>} : vector<2x8x8xf32>, vector<2x8x8xf32>, vector<2x8x8xf32> -> vector<2x8x8xf32>
    "tpu.trace_stop"() : () -> ()
    %49 = vector.shape_cast %48 : vector<2x8x8xf32> to vector<16x8xf32>
    %50 = vector.extract_strided_slice %21 {offsets = [0, 0], sizes = [8, 32], strides = [1, 1]} : vector<32x32xf32> to vector<8x32xf32>
    %cst_23 = arith.constant dense<0.000000e+00> : vector<16x32xf32>
    %51 = tpu.matmul %49, %50, %cst_23 {dimension_numbers = #tpu.dot_dimension_numbers<[1], [0], [0], [1], [0, 0, 1, 1], [], []>} : vector<16x8xf32>, vector<8x32xf32>, vector<16x32xf32> -> vector<16x32xf32>
    %52 = arith.addf %29, %51 : vector<16x32xf32>
    %53 = vector.extract_strided_slice %17 {offsets = [0, 0, 8], sizes = [2, 8, 8], strides = [1, 1, 1]} : vector<2x8x32xf32> to vector<2x8x8xf32>
    %54 = vector.extract_strided_slice %18 {offsets = [0, 0, 8], sizes = [2, 8, 8], strides = [1, 1, 1]} : vector<2x8x32xf32> to vector<2x8x8xf32>
    "tpu.trace_start"() <{level = 10 : i32, message = "bqd,bkd->bqk"}> : () -> ()
    %cst_24 = arith.constant dense<0.000000e+00> : vector<2x8x8xf32>
    %55 = tpu.matmul %53, %54, %cst_24 {dimension_numbers = #tpu.dot_dimension_numbers<[2], [2], [1], [1], [0, 0, 0, 1, 1, 1], [0], [0]>} : vector<2x8x8xf32>, vector<2x8x8xf32>, vector<2x8x8xf32> -> vector<2x8x8xf32>
    "tpu.trace_stop"() : () -> ()
    %cst_25 = arith.constant 0.353553385 : f32
    %56 = vector.broadcast %cst_25 : f32 to vector<2x8x8xf32>
    %57 = arith.mulf %55, %56 : vector<2x8x8xf32>
    %58 = vector.broadcast %28 : vector<1x8x8xf32> to vector<2x8x8xf32>
    %59 = arith.addf %57, %58 : vector<2x8x8xf32>
    %cst_26 = arith.constant dense<0xFF800000> : vector<2x8xf32>
    %60 = vector.multi_reduction <maximumf>, %59, %cst_26 [2] : vector<2x8x8xf32> to vector<2x8xf32>
    %61 = vector.shape_cast %60 : vector<2x8xf32> to vector<2x8x1xf32>
    %62 = vector.broadcast %61 : vector<2x8x1xf32> to vector<2x8x8xf32>
    %63 = arith.subf %59, %62 : vector<2x8x8xf32>
    %64 = math.exp %63 : vector<2x8x8xf32>
    %cst_27 = arith.constant dense<0.000000e+00> : vector<2x8xf32>
    %65 = vector.multi_reduction <add>, %64, %cst_27 [2] : vector<2x8x8xf32> to vector<2x8xf32>
    %66 = vector.shape_cast %65 : vector<2x8xf32> to vector<2x8x1xf32>
    %67 = tpu.reciprocal %66 {approx = true} : vector<2x8x1xf32> -> vector<2x8x1xf32>
    %68 = vector.broadcast %67 : vector<2x8x1xf32> to vector<2x8x8xf32>
    %69 = arith.mulf %64, %68 : vector<2x8x8xf32>
    %70 = vector.extract_strided_slice %19 {offsets = [0, 0, 8], sizes = [2, 8, 8], strides = [1, 1, 1]} : vector<2x8x32xf32> to vector<2x8x8xf32>
    "tpu.trace_start"() <{level = 10 : i32, message = "bqk,bkd->bqd"}> : () -> ()
    %cst_28 = arith.constant dense<0.000000e+00> : vector<2x8x8xf32>
    %71 = tpu.matmul %69, %70, %cst_28 {dimension_numbers = #tpu.dot_dimension_numbers<[2], [1], [1], [2], [0, 0, 0, 1, 1, 2], [0], [0]>} : vector<2x8x8xf32>, vector<2x8x8xf32>, vector<2x8x8xf32> -> vector<2x8x8xf32>
    "tpu.trace_stop"() : () -> ()
    %72 = vector.shape_cast %71 : vector<2x8x8xf32> to vector<16x8xf32>
    %73 = vector.extract_strided_slice %21 {offsets = [8, 0], sizes = [8, 32], strides = [1, 1]} : vector<32x32xf32> to vector<8x32xf32>
    %cst_29 = arith.constant dense<0.000000e+00> : vector<16x32xf32>
    %74 = tpu.matmul %72, %73, %cst_29 {dimension_numbers = #tpu.dot_dimension_numbers<[1], [0], [0], [1], [0, 0, 1, 1], [], []>} : vector<16x8xf32>, vector<8x32xf32>, vector<16x32xf32> -> vector<16x32xf32>
    %75 = arith.addf %52, %74 : vector<16x32xf32>
    %76 = vector.extract_strided_slice %17 {offsets = [0, 0, 16], sizes = [2, 8, 8], strides = [1, 1, 1]} : vector<2x8x32xf32> to vector<2x8x8xf32>
    %77 = vector.extract_strided_slice %18 {offsets = [0, 0, 16], sizes = [2, 8, 8], strides = [1, 1, 1]} : vector<2x8x32xf32> to vector<2x8x8xf32>
    "tpu.trace_start"() <{level = 10 : i32, message = "bqd,bkd->bqk"}> : () -> ()
    %cst_30 = arith.constant dense<0.000000e+00> : vector<2x8x8xf32>
    %78 = tpu.matmul %76, %77, %cst_30 {dimension_numbers = #tpu.dot_dimension_numbers<[2], [2], [1], [1], [0, 0, 0, 1, 1, 1], [0], [0]>} : vector<2x8x8xf32>, vector<2x8x8xf32>, vector<2x8x8xf32> -> vector<2x8x8xf32>
    "tpu.trace_stop"() : () -> ()
    %cst_31 = arith.constant 0.353553385 : f32
    %79 = vector.broadcast %cst_31 : f32 to vector<2x8x8xf32>
    %80 = arith.mulf %78, %79 : vector<2x8x8xf32>
    %81 = vector.broadcast %28 : vector<1x8x8xf32> to vector<2x8x8xf32>
    %82 = arith.addf %80, %81 : vector<2x8x8xf32>
    %cst_32 = arith.constant dense<0xFF800000> : vector<2x8xf32>
    %83 = vector.multi_reduction <maximumf>, %82, %cst_32 [2] : vector<2x8x8xf32> to vector<2x8xf32>
    %84 = vector.shape_cast %83 : vector<2x8xf32> to vector<2x8x1xf32>
    %85 = vector.broadcast %84 : vector<2x8x1xf32> to vector<2x8x8xf32>
    %86 = arith.subf %82, %85 : vector<2x8x8xf32>
    %87 = math.exp %86 : vector<2x8x8xf32>
    %cst_33 = arith.constant dense<0.000000e+00> : vector<2x8xf32>
    %88 = vector.multi_reduction <add>, %87, %cst_33 [2] : vector<2x8x8xf32> to vector<2x8xf32>
    %89 = vector.shape_cast %88 : vector<2x8xf32> to vector<2x8x1xf32>
    %90 = tpu.reciprocal %89 {approx = true} : vector<2x8x1xf32> -> vector<2x8x1xf32>
    %91 = vector.broadcast %90 : vector<2x8x1xf32> to vector<2x8x8xf32>
    %92 = arith.mulf %87, %91 : vector<2x8x8xf32>
    %93 = vector.extract_strided_slice %19 {offsets = [0, 0, 16], sizes = [2, 8, 8], strides = [1, 1, 1]} : vector<2x8x32xf32> to vector<2x8x8xf32>
    "tpu.trace_start"() <{level = 10 : i32, message = "bqk,bkd->bqd"}> : () -> ()
    %cst_34 = arith.constant dense<0.000000e+00> : vector<2x8x8xf32>
    %94 = tpu.matmul %92, %93, %cst_34 {dimension_numbers = #tpu.dot_dimension_numbers<[2], [1], [1], [2], [0, 0, 0, 1, 1, 2], [0], [0]>} : vector<2x8x8xf32>, vector<2x8x8xf32>, vector<2x8x8xf32> -> vector<2x8x8xf32>
    "tpu.trace_stop"() : () -> ()
    %95 = vector.shape_cast %94 : vector<2x8x8xf32> to vector<16x8xf32>
    %96 = vector.extract_strided_slice %21 {offsets = [16, 0], sizes = [8, 32], strides = [1, 1]} : vector<32x32xf32> to vector<8x32xf32>
    %cst_35 = arith.constant dense<0.000000e+00> : vector<16x32xf32>
    %97 = tpu.matmul %95, %96, %cst_35 {dimension_numbers = #tpu.dot_dimension_numbers<[1], [0], [0], [1], [0, 0, 1, 1], [], []>} : vector<16x8xf32>, vector<8x32xf32>, vector<16x32xf32> -> vector<16x32xf32>
    %98 = arith.addf %75, %97 : vector<16x32xf32>
    %99 = vector.extract_strided_slice %17 {offsets = [0, 0, 24], sizes = [2, 8, 8], strides = [1, 1, 1]} : vector<2x8x32xf32> to vector<2x8x8xf32>
    %100 = vector.extract_strided_slice %18 {offsets = [0, 0, 24], sizes = [2, 8, 8], strides = [1, 1, 1]} : vector<2x8x32xf32> to vector<2x8x8xf32>
    "tpu.trace_start"() <{level = 10 : i32, message = "bqd,bkd->bqk"}> : () -> ()
    %cst_36 = arith.constant dense<0.000000e+00> : vector<2x8x8xf32>
    %101 = tpu.matmul %99, %100, %cst_36 {dimension_numbers = #tpu.dot_dimension_numbers<[2], [2], [1], [1], [0, 0, 0, 1, 1, 1], [0], [0]>} : vector<2x8x8xf32>, vector<2x8x8xf32>, vector<2x8x8xf32> -> vector<2x8x8xf32>
    "tpu.trace_stop"() : () -> ()
    %cst_37 = arith.constant 0.353553385 : f32
    %102 = vector.broadcast %cst_37 : f32 to vector<2x8x8xf32>
    %103 = arith.mulf %101, %102 : vector<2x8x8xf32>
    %104 = vector.broadcast %28 : vector<1x8x8xf32> to vector<2x8x8xf32>
    %105 = arith.addf %103, %104 : vector<2x8x8xf32>
    %cst_38 = arith.constant dense<0xFF800000> : vector<2x8xf32>
    %106 = vector.multi_reduction <maximumf>, %105, %cst_38 [2] : vector<2x8x8xf32> to vector<2x8xf32>
    %107 = vector.shape_cast %106 : vector<2x8xf32> to vector<2x8x1xf32>
    %108 = vector.broadcast %107 : vector<2x8x1xf32> to vector<2x8x8xf32>
    %109 = arith.subf %105, %108 : vector<2x8x8xf32>
    %110 = math.exp %109 : vector<2x8x8xf32>
    %cst_39 = arith.constant dense<0.000000e+00> : vector<2x8xf32>
    %111 = vector.multi_reduction <add>, %110, %cst_39 [2] : vector<2x8x8xf32> to vector<2x8xf32>
    %112 = vector.shape_cast %111 : vector<2x8xf32> to vector<2x8x1xf32>
    %113 = tpu.reciprocal %112 {approx = true} : vector<2x8x1xf32> -> vector<2x8x1xf32>
    %114 = vector.broadcast %113 : vector<2x8x1xf32> to vector<2x8x8xf32>
    %115 = arith.mulf %110, %114 : vector<2x8x8xf32>
    %116 = vector.extract_strided_slice %19 {offsets = [0, 0, 24], sizes = [2, 8, 8], strides = [1, 1, 1]} : vector<2x8x32xf32> to vector<2x8x8xf32>
    "tpu.trace_start"() <{level = 10 : i32, message = "bqk,bkd->bqd"}> : () -> ()
    %cst_40 = arith.constant dense<0.000000e+00> : vector<2x8x8xf32>
    %117 = tpu.matmul %115, %116, %cst_40 {dimension_numbers = #tpu.dot_dimension_numbers<[2], [1], [1], [2], [0, 0, 0, 1, 1, 2], [0], [0]>} : vector<2x8x8xf32>, vector<2x8x8xf32>, vector<2x8x8xf32> -> vector<2x8x8xf32>
    "tpu.trace_stop"() : () -> ()
    %118 = vector.shape_cast %117 : vector<2x8x8xf32> to vector<16x8xf32>
    %119 = vector.extract_strided_slice %21 {offsets = [24, 0], sizes = [8, 32], strides = [1, 1]} : vector<32x32xf32> to vector<8x32xf32>
    %cst_41 = arith.constant dense<0.000000e+00> : vector<16x32xf32>
    %120 = tpu.matmul %118, %119, %cst_41 {dimension_numbers = #tpu.dot_dimension_numbers<[1], [0], [0], [1], [0, 0, 1, 1], [], []>} : vector<16x8xf32>, vector<8x32xf32>, vector<16x32xf32> -> vector<16x32xf32>
    %121 = arith.addf %98, %120 : vector<16x32xf32>
    %c0_42 = arith.constant 0 : index
    %c0_43 = arith.constant 0 : index
    %c0_44 = arith.constant 0 : index
    %122 = vector.load %arg9[%c0_42, %c0_43, %c0_44] : memref<1x1x32xf32, #tpu.memory_space<vmem>>, vector<1x1x32xf32>
    %123 = vector.shape_cast %122 : vector<1x1x32xf32> to vector<1x32xf32>
    %124 = vector.broadcast %123 : vector<1x32xf32> to vector<16x32xf32>
    %125 = arith.addf %121, %124 : vector<16x32xf32>
    %126 = arith.addf %4, %125 : vector<16x32xf32>
    %c0_45 = arith.constant 0 : index
    %c0_46 = arith.constant 0 : index
    %c0_47 = arith.constant 0 : index
    %127 = vector.load %arg20[%c0_45, %c0_46, %c0_47] : memref<1x3x32xf32, #tpu.memory_space<vmem>>, vector<1x3x32xf32>
    %128 = vector.extract_strided_slice %127 {offsets = [0, 0, 0], sizes = [1, 1, 32], strides = [1, 1, 1]} : vector<1x3x32xf32> to vector<1x1x32xf32>
    %129 = vector.shape_cast %128 : vector<1x1x32xf32> to vector<1x32xf32>
    %c0_48 = arith.constant 0 : index
    %c0_49 = arith.constant 0 : index
    %c0_50 = arith.constant 0 : index
    %130 = vector.load %arg21[%c0_48, %c0_49, %c0_50] : memref<1x3x32xf32, #tpu.memory_space<vmem>>, vector<1x3x32xf32>
    %131 = vector.extract_strided_slice %130 {offsets = [0, 0, 0], sizes = [1, 1, 32], strides = [1, 1, 1]} : vector<1x3x32xf32> to vector<1x1x32xf32>
    %132 = vector.shape_cast %131 : vector<1x1x32xf32> to vector<1x32xf32>
    %cst_51 = arith.constant dense<0.000000e+00> : vector<16xf32>
    %133 = vector.multi_reduction <add>, %126, %cst_51 [1] : vector<16x32xf32> to vector<16xf32>
    %134 = vector.shape_cast %133 : vector<16xf32> to vector<16x1xf32>
    %cst_52 = arith.constant 3.200000e+01 : f32
    %135 = vector.broadcast %cst_52 : f32 to vector<16x1xf32>
    %136 = arith.divf %134, %135 : vector<16x1xf32>
    %137 = vector.broadcast %136 : vector<16x1xf32> to vector<16x32xf32>
    %138 = arith.subf %126, %137 : vector<16x32xf32>
    %139 = arith.mulf %138, %138 : vector<16x32xf32>
    %cst_53 = arith.constant dense<0.000000e+00> : vector<16xf32>
    %140 = vector.multi_reduction <add>, %139, %cst_53 [1] : vector<16x32xf32> to vector<16xf32>
    %141 = vector.shape_cast %140 : vector<16xf32> to vector<16x1xf32>
    %cst_54 = arith.constant 3.200000e+01 : f32
    %142 = vector.broadcast %cst_54 : f32 to vector<16x1xf32>
    %143 = arith.divf %141, %142 : vector<16x1xf32>
    %144 = vector.broadcast %136 : vector<16x1xf32> to vector<16x32xf32>
    %145 = arith.subf %126, %144 : vector<16x32xf32>
    %cst_55 = arith.constant 9.99999974E-6 : f32
    %146 = vector.broadcast %cst_55 : f32 to vector<16x1xf32>
    %147 = arith.addf %143, %146 : vector<16x1xf32>
    %148 = math.rsqrt %147 : vector<16x1xf32>
    %149 = vector.broadcast %148 : vector<16x1xf32> to vector<16x32xf32>
    %150 = arith.mulf %145, %149 : vector<16x32xf32>
    %151 = vector.broadcast %129 : vector<1x32xf32> to vector<16x32xf32>
    %152 = arith.mulf %150, %151 : vector<16x32xf32>
    %153 = vector.broadcast %132 : vector<1x32xf32> to vector<16x32xf32>
    %154 = arith.addf %152, %153 : vector<16x32xf32>
    %c0_56 = arith.constant 0 : index
    %c0_57 = arith.constant 0 : index
    %c0_58 = arith.constant 0 : index
    %155 = vector.load %arg10[%c0_56, %c0_57, %c0_58] : memref<1x32x32xf32, #tpu.memory_space<vmem>>, vector<1x32x32xf32>
    %156 = vector.shape_cast %155 : vector<1x32x32xf32> to vector<32x32xf32>
    %cst_59 = arith.constant dense<0.000000e+00> : vector<16x32xf32>
    %157 = tpu.matmul %154, %156, %cst_59 {dimension_numbers = #tpu.dot_dimension_numbers<[1], [0], [0], [1], [0, 0, 1, 1], [], []>} : vector<16x32xf32>, vector<32x32xf32>, vector<16x32xf32> -> vector<16x32xf32>
    %c0_60 = arith.constant 0 : index
    %c0_61 = arith.constant 0 : index
    %c0_62 = arith.constant 0 : index
    %158 = vector.load %arg11[%c0_60, %c0_61, %c0_62] : memref<1x1x32xf32, #tpu.memory_space<vmem>>, vector<1x1x32xf32>
    %159 = vector.shape_cast %158 : vector<1x1x32xf32> to vector<1x32xf32>
    %160 = vector.broadcast %159 : vector<1x32xf32> to vector<16x32xf32>
    %161 = arith.addf %157, %160 : vector<16x32xf32>
    %c0_63 = arith.constant 0 : index
    %c0_64 = arith.constant 0 : index
    %c0_65 = arith.constant 0 : index
    %162 = vector.load %arg12[%c0_63, %c0_64, %c0_65] : memref<1x32x64xf32, #tpu.memory_space<vmem>>, vector<1x32x64xf32>
    %163 = vector.shape_cast %162 : vector<1x32x64xf32> to vector<32x64xf32>
    %cst_66 = arith.constant dense<0.000000e+00> : vector<16x64xf32>
    %164 = tpu.matmul %6, %163, %cst_66 {dimension_numbers = #tpu.dot_dimension_numbers<[1], [0], [0], [1], [0, 0, 1, 1], [], []>} : vector<16x32xf32>, vector<32x64xf32>, vector<16x64xf32> -> vector<16x64xf32>
    %c0_67 = arith.constant 0 : index
    %c0_68 = arith.constant 0 : index
    %c0_69 = arith.constant 0 : index
    %165 = vector.load %arg13[%c0_67, %c0_68, %c0_69] : memref<1x1x64xf32, #tpu.memory_space<vmem>>, vector<1x1x64xf32>
    %166 = vector.shape_cast %165 : vector<1x1x64xf32> to vector<1x64xf32>
    %167 = vector.broadcast %166 : vector<1x64xf32> to vector<16x64xf32>
    %168 = arith.addf %164, %167 : vector<16x64xf32>
    %169 = vector.extract_strided_slice %168 {offsets = [0, 0], sizes = [16, 32], strides = [1, 1]} : vector<16x64xf32> to vector<16x32xf32>
    %170 = vector.extract_strided_slice %168 {offsets = [0, 32], sizes = [16, 32], strides = [1, 1]} : vector<16x64xf32> to vector<16x32xf32>
    %171 = vector.shape_cast %161 : vector<16x32xf32> to vector<2x8x32xf32>
    %172 = vector.shape_cast %169 : vector<16x32xf32> to vector<2x8x32xf32>
    %173 = vector.shape_cast %170 : vector<16x32xf32> to vector<2x8x32xf32>
    %c0_70 = arith.constant 0 : index
    %c0_71 = arith.constant 0 : index
    %c0_72 = arith.constant 0 : index
    %174 = vector.load %arg14[%c0_70, %c0_71, %c0_72] : memref<1x32x32xf32, #tpu.memory_space<vmem>>, vector<1x32x32xf32>
    %175 = vector.shape_cast %174 : vector<1x32x32xf32> to vector<32x32xf32>
    %cst_73 = arith.constant 0.000000e+00 : f32
    %176 = vector.broadcast %cst_73 : f32 to vector<16x32xf32>
    %177 = vector.extract_strided_slice %171 {offsets = [0, 0, 0], sizes = [2, 8, 8], strides = [1, 1, 1]} : vector<2x8x32xf32> to vector<2x8x8xf32>
    %178 = vector.extract_strided_slice %172 {offsets = [0, 0, 0], sizes = [2, 8, 8], strides = [1, 1, 1]} : vector<2x8x32xf32> to vector<2x8x8xf32>
    "tpu.trace_start"() <{level = 10 : i32, message = "bqd,bkd->bqk"}> : () -> ()
    %cst_74 = arith.constant dense<0.000000e+00> : vector<2x8x8xf32>
    %179 = tpu.matmul %177, %178, %cst_74 {dimension_numbers = #tpu.dot_dimension_numbers<[2], [2], [1], [1], [0, 0, 0, 1, 1, 1], [0], [0]>} : vector<2x8x8xf32>, vector<2x8x8xf32>, vector<2x8x8xf32> -> vector<2x8x8xf32>
    "tpu.trace_stop"() : () -> ()
    %cst_75 = arith.constant 0.353553385 : f32
    %180 = vector.broadcast %cst_75 : f32 to vector<2x8x8xf32>
    %181 = arith.mulf %179, %180 : vector<2x8x8xf32>
    %cst_76 = arith.constant dense<0xFF800000> : vector<2x8xf32>
    %182 = vector.multi_reduction <maximumf>, %181, %cst_76 [2] : vector<2x8x8xf32> to vector<2x8xf32>
    %183 = vector.shape_cast %182 : vector<2x8xf32> to vector<2x8x1xf32>
    %184 = vector.broadcast %183 : vector<2x8x1xf32> to vector<2x8x8xf32>
    %185 = arith.subf %181, %184 : vector<2x8x8xf32>
    %186 = math.exp %185 : vector<2x8x8xf32>
    %cst_77 = arith.constant dense<0.000000e+00> : vector<2x8xf32>
    %187 = vector.multi_reduction <add>, %186, %cst_77 [2] : vector<2x8x8xf32> to vector<2x8xf32>
    %188 = vector.shape_cast %187 : vector<2x8xf32> to vector<2x8x1xf32>
    %189 = tpu.reciprocal %188 {approx = true} : vector<2x8x1xf32> -> vector<2x8x1xf32>
    %190 = vector.broadcast %189 : vector<2x8x1xf32> to vector<2x8x8xf32>
    %191 = arith.mulf %186, %190 : vector<2x8x8xf32>
    %192 = vector.extract_strided_slice %173 {offsets = [0, 0, 0], sizes = [2, 8, 8], strides = [1, 1, 1]} : vector<2x8x32xf32> to vector<2x8x8xf32>
    "tpu.trace_start"() <{level = 10 : i32, message = "bqk,bkd->bqd"}> : () -> ()
    %cst_78 = arith.constant dense<0.000000e+00> : vector<2x8x8xf32>
    %193 = tpu.matmul %191, %192, %cst_78 {dimension_numbers = #tpu.dot_dimension_numbers<[2], [1], [1], [2], [0, 0, 0, 1, 1, 2], [0], [0]>} : vector<2x8x8xf32>, vector<2x8x8xf32>, vector<2x8x8xf32> -> vector<2x8x8xf32>
    "tpu.trace_stop"() : () -> ()
    %194 = vector.shape_cast %193 : vector<2x8x8xf32> to vector<16x8xf32>
    %195 = vector.extract_strided_slice %175 {offsets = [0, 0], sizes = [8, 32], strides = [1, 1]} : vector<32x32xf32> to vector<8x32xf32>
    %cst_79 = arith.constant dense<0.000000e+00> : vector<16x32xf32>
    %196 = tpu.matmul %194, %195, %cst_79 {dimension_numbers = #tpu.dot_dimension_numbers<[1], [0], [0], [1], [0, 0, 1, 1], [], []>} : vector<16x8xf32>, vector<8x32xf32>, vector<16x32xf32> -> vector<16x32xf32>
    %197 = arith.addf %176, %196 : vector<16x32xf32>
    %198 = vector.extract_strided_slice %171 {offsets = [0, 0, 8], sizes = [2, 8, 8], strides = [1, 1, 1]} : vector<2x8x32xf32> to vector<2x8x8xf32>
    %199 = vector.extract_strided_slice %172 {offsets = [0, 0, 8], sizes = [2, 8, 8], strides = [1, 1, 1]} : vector<2x8x32xf32> to vector<2x8x8xf32>
    "tpu.trace_start"() <{level = 10 : i32, message = "bqd,bkd->bqk"}> : () -> ()
    %cst_80 = arith.constant dense<0.000000e+00> : vector<2x8x8xf32>
    %200 = tpu.matmul %198, %199, %cst_80 {dimension_numbers = #tpu.dot_dimension_numbers<[2], [2], [1], [1], [0, 0, 0, 1, 1, 1], [0], [0]>} : vector<2x8x8xf32>, vector<2x8x8xf32>, vector<2x8x8xf32> -> vector<2x8x8xf32>
    "tpu.trace_stop"() : () -> ()
    %cst_81 = arith.constant 0.353553385 : f32
    %201 = vector.broadcast %cst_81 : f32 to vector<2x8x8xf32>
    %202 = arith.mulf %200, %201 : vector<2x8x8xf32>
    %cst_82 = arith.constant dense<0xFF800000> : vector<2x8xf32>
    %203 = vector.multi_reduction <maximumf>, %202, %cst_82 [2] : vector<2x8x8xf32> to vector<2x8xf32>
    %204 = vector.shape_cast %203 : vector<2x8xf32> to vector<2x8x1xf32>
    %205 = vector.broadcast %204 : vector<2x8x1xf32> to vector<2x8x8xf32>
    %206 = arith.subf %202, %205 : vector<2x8x8xf32>
    %207 = math.exp %206 : vector<2x8x8xf32>
    %cst_83 = arith.constant dense<0.000000e+00> : vector<2x8xf32>
    %208 = vector.multi_reduction <add>, %207, %cst_83 [2] : vector<2x8x8xf32> to vector<2x8xf32>
    %209 = vector.shape_cast %208 : vector<2x8xf32> to vector<2x8x1xf32>
    %210 = tpu.reciprocal %209 {approx = true} : vector<2x8x1xf32> -> vector<2x8x1xf32>
    %211 = vector.broadcast %210 : vector<2x8x1xf32> to vector<2x8x8xf32>
    %212 = arith.mulf %207, %211 : vector<2x8x8xf32>
    %213 = vector.extract_strided_slice %173 {offsets = [0, 0, 8], sizes = [2, 8, 8], strides = [1, 1, 1]} : vector<2x8x32xf32> to vector<2x8x8xf32>
    "tpu.trace_start"() <{level = 10 : i32, message = "bqk,bkd->bqd"}> : () -> ()
    %cst_84 = arith.constant dense<0.000000e+00> : vector<2x8x8xf32>
    %214 = tpu.matmul %212, %213, %cst_84 {dimension_numbers = #tpu.dot_dimension_numbers<[2], [1], [1], [2], [0, 0, 0, 1, 1, 2], [0], [0]>} : vector<2x8x8xf32>, vector<2x8x8xf32>, vector<2x8x8xf32> -> vector<2x8x8xf32>
    "tpu.trace_stop"() : () -> ()
    %215 = vector.shape_cast %214 : vector<2x8x8xf32> to vector<16x8xf32>
    %216 = vector.extract_strided_slice %175 {offsets = [8, 0], sizes = [8, 32], strides = [1, 1]} : vector<32x32xf32> to vector<8x32xf32>
    %cst_85 = arith.constant dense<0.000000e+00> : vector<16x32xf32>
    %217 = tpu.matmul %215, %216, %cst_85 {dimension_numbers = #tpu.dot_dimension_numbers<[1], [0], [0], [1], [0, 0, 1, 1], [], []>} : vector<16x8xf32>, vector<8x32xf32>, vector<16x32xf32> -> vector<16x32xf32>
    %218 = arith.addf %197, %217 : vector<16x32xf32>
    %219 = vector.extract_strided_slice %171 {offsets = [0, 0, 16], sizes = [2, 8, 8], strides = [1, 1, 1]} : vector<2x8x32xf32> to vector<2x8x8xf32>
    %220 = vector.extract_strided_slice %172 {offsets = [0, 0, 16], sizes = [2, 8, 8], strides = [1, 1, 1]} : vector<2x8x32xf32> to vector<2x8x8xf32>
    "tpu.trace_start"() <{level = 10 : i32, message = "bqd,bkd->bqk"}> : () -> ()
    %cst_86 = arith.constant dense<0.000000e+00> : vector<2x8x8xf32>
    %221 = tpu.matmul %219, %220, %cst_86 {dimension_numbers = #tpu.dot_dimension_numbers<[2], [2], [1], [1], [0, 0, 0, 1, 1, 1], [0], [0]>} : vector<2x8x8xf32>, vector<2x8x8xf32>, vector<2x8x8xf32> -> vector<2x8x8xf32>
    "tpu.trace_stop"() : () -> ()
    %cst_87 = arith.constant 0.353553385 : f32
    %222 = vector.broadcast %cst_87 : f32 to vector<2x8x8xf32>
    %223 = arith.mulf %221, %222 : vector<2x8x8xf32>
    %cst_88 = arith.constant dense<0xFF800000> : vector<2x8xf32>
    %224 = vector.multi_reduction <maximumf>, %223, %cst_88 [2] : vector<2x8x8xf32> to vector<2x8xf32>
    %225 = vector.shape_cast %224 : vector<2x8xf32> to vector<2x8x1xf32>
    %226 = vector.broadcast %225 : vector<2x8x1xf32> to vector<2x8x8xf32>
    %227 = arith.subf %223, %226 : vector<2x8x8xf32>
    %228 = math.exp %227 : vector<2x8x8xf32>
    %cst_89 = arith.constant dense<0.000000e+00> : vector<2x8xf32>
    %229 = vector.multi_reduction <add>, %228, %cst_89 [2] : vector<2x8x8xf32> to vector<2x8xf32>
    %230 = vector.shape_cast %229 : vector<2x8xf32> to vector<2x8x1xf32>
    %231 = tpu.reciprocal %230 {approx = true} : vector<2x8x1xf32> -> vector<2x8x1xf32>
    %232 = vector.broadcast %231 : vector<2x8x1xf32> to vector<2x8x8xf32>
    %233 = arith.mulf %228, %232 : vector<2x8x8xf32>
    %234 = vector.extract_strided_slice %173 {offsets = [0, 0, 16], sizes = [2, 8, 8], strides = [1, 1, 1]} : vector<2x8x32xf32> to vector<2x8x8xf32>
    "tpu.trace_start"() <{level = 10 : i32, message = "bqk,bkd->bqd"}> : () -> ()
    %cst_90 = arith.constant dense<0.000000e+00> : vector<2x8x8xf32>
    %235 = tpu.matmul %233, %234, %cst_90 {dimension_numbers = #tpu.dot_dimension_numbers<[2], [1], [1], [2], [0, 0, 0, 1, 1, 2], [0], [0]>} : vector<2x8x8xf32>, vector<2x8x8xf32>, vector<2x8x8xf32> -> vector<2x8x8xf32>
    "tpu.trace_stop"() : () -> ()
    %236 = vector.shape_cast %235 : vector<2x8x8xf32> to vector<16x8xf32>
    %237 = vector.extract_strided_slice %175 {offsets = [16, 0], sizes = [8, 32], strides = [1, 1]} : vector<32x32xf32> to vector<8x32xf32>
    %cst_91 = arith.constant dense<0.000000e+00> : vector<16x32xf32>
    %238 = tpu.matmul %236, %237, %cst_91 {dimension_numbers = #tpu.dot_dimension_numbers<[1], [0], [0], [1], [0, 0, 1, 1], [], []>} : vector<16x8xf32>, vector<8x32xf32>, vector<16x32xf32> -> vector<16x32xf32>
    %239 = arith.addf %218, %238 : vector<16x32xf32>
    %240 = vector.extract_strided_slice %171 {offsets = [0, 0, 24], sizes = [2, 8, 8], strides = [1, 1, 1]} : vector<2x8x32xf32> to vector<2x8x8xf32>
    %241 = vector.extract_strided_slice %172 {offsets = [0, 0, 24], sizes = [2, 8, 8], strides = [1, 1, 1]} : vector<2x8x32xf32> to vector<2x8x8xf32>
    "tpu.trace_start"() <{level = 10 : i32, message = "bqd,bkd->bqk"}> : () -> ()
    %cst_92 = arith.constant dense<0.000000e+00> : vector<2x8x8xf32>
    %242 = tpu.matmul %240, %241, %cst_92 {dimension_numbers = #tpu.dot_dimension_numbers<[2], [2], [1], [1], [0, 0, 0, 1, 1, 1], [0], [0]>} : vector<2x8x8xf32>, vector<2x8x8xf32>, vector<2x8x8xf32> -> vector<2x8x8xf32>
    "tpu.trace_stop"() : () -> ()
    %cst_93 = arith.constant 0.353553385 : f32
    %243 = vector.broadcast %cst_93 : f32 to vector<2x8x8xf32>
    %244 = arith.mulf %242, %243 : vector<2x8x8xf32>
    %cst_94 = arith.constant dense<0xFF800000> : vector<2x8xf32>
    %245 = vector.multi_reduction <maximumf>, %244, %cst_94 [2] : vector<2x8x8xf32> to vector<2x8xf32>
    %246 = vector.shape_cast %245 : vector<2x8xf32> to vector<2x8x1xf32>
    %247 = vector.broadcast %246 : vector<2x8x1xf32> to vector<2x8x8xf32>
    %248 = arith.subf %244, %247 : vector<2x8x8xf32>
    %249 = math.exp %248 : vector<2x8x8xf32>
    %cst_95 = arith.constant dense<0.000000e+00> : vector<2x8xf32>
    %250 = vector.multi_reduction <add>, %249, %cst_95 [2] : vector<2x8x8xf32> to vector<2x8xf32>
    %251 = vector.shape_cast %250 : vector<2x8xf32> to vector<2x8x1xf32>
    %252 = tpu.reciprocal %251 {approx = true} : vector<2x8x1xf32> -> vector<2x8x1xf32>
    %253 = vector.broadcast %252 : vector<2x8x1xf32> to vector<2x8x8xf32>
    %254 = arith.mulf %249, %253 : vector<2x8x8xf32>
    %255 = vector.extract_strided_slice %173 {offsets = [0, 0, 24], sizes = [2, 8, 8], strides = [1, 1, 1]} : vector<2x8x32xf32> to vector<2x8x8xf32>
    "tpu.trace_start"() <{level = 10 : i32, message = "bqk,bkd->bqd"}> : () -> ()
    %cst_96 = arith.constant dense<0.000000e+00> : vector<2x8x8xf32>
    %256 = tpu.matmul %254, %255, %cst_96 {dimension_numbers = #tpu.dot_dimension_numbers<[2], [1], [1], [2], [0, 0, 0, 1, 1, 2], [0], [0]>} : vector<2x8x8xf32>, vector<2x8x8xf32>, vector<2x8x8xf32> -> vector<2x8x8xf32>
    "tpu.trace_stop"() : () -> ()
    %257 = vector.shape_cast %256 : vector<2x8x8xf32> to vector<16x8xf32>
    %258 = vector.extract_strided_slice %175 {offsets = [24, 0], sizes = [8, 32], strides = [1, 1]} : vector<32x32xf32> to vector<8x32xf32>
    %cst_97 = arith.constant dense<0.000000e+00> : vector<16x32xf32>
    %259 = tpu.matmul %257, %258, %cst_97 {dimension_numbers = #tpu.dot_dimension_numbers<[1], [0], [0], [1], [0, 0, 1, 1], [], []>} : vector<16x8xf32>, vector<8x32xf32>, vector<16x32xf32> -> vector<16x32xf32>
    %260 = arith.addf %239, %259 : vector<16x32xf32>
    %c0_98 = arith.constant 0 : index
    %c0_99 = arith.constant 0 : index
    %c0_100 = arith.constant 0 : index
    %261 = vector.load %arg15[%c0_98, %c0_99, %c0_100] : memref<1x1x32xf32, #tpu.memory_space<vmem>>, vector<1x1x32xf32>
    %262 = vector.shape_cast %261 : vector<1x1x32xf32> to vector<1x32xf32>
    %263 = vector.broadcast %262 : vector<1x32xf32> to vector<16x32xf32>
    %264 = arith.addf %260, %263 : vector<16x32xf32>
    %265 = arith.addf %154, %264 : vector<16x32xf32>
    %c0_101 = arith.constant 0 : index
    %c0_102 = arith.constant 0 : index
    %c0_103 = arith.constant 0 : index
    %266 = vector.load %arg20[%c0_101, %c0_102, %c0_103] : memref<1x3x32xf32, #tpu.memory_space<vmem>>, vector<1x3x32xf32>
    %267 = vector.extract_strided_slice %266 {offsets = [0, 1, 0], sizes = [1, 1, 32], strides = [1, 1, 1]} : vector<1x3x32xf32> to vector<1x1x32xf32>
    %268 = vector.shape_cast %267 : vector<1x1x32xf32> to vector<1x32xf32>
    %c0_104 = arith.constant 0 : index
    %c0_105 = arith.constant 0 : index
    %c0_106 = arith.constant 0 : index
    %269 = vector.load %arg21[%c0_104, %c0_105, %c0_106] : memref<1x3x32xf32, #tpu.memory_space<vmem>>, vector<1x3x32xf32>
    %270 = vector.extract_strided_slice %269 {offsets = [0, 1, 0], sizes = [1, 1, 32], strides = [1, 1, 1]} : vector<1x3x32xf32> to vector<1x1x32xf32>
    %271 = vector.shape_cast %270 : vector<1x1x32xf32> to vector<1x32xf32>
    %cst_107 = arith.constant dense<0.000000e+00> : vector<16xf32>
    %272 = vector.multi_reduction <add>, %265, %cst_107 [1] : vector<16x32xf32> to vector<16xf32>
    %273 = vector.shape_cast %272 : vector<16xf32> to vector<16x1xf32>
    %cst_108 = arith.constant 3.200000e+01 : f32
    %274 = vector.broadcast %cst_108 : f32 to vector<16x1xf32>
    %275 = arith.divf %273, %274 : vector<16x1xf32>
    %276 = vector.broadcast %275 : vector<16x1xf32> to vector<16x32xf32>
    %277 = arith.subf %265, %276 : vector<16x32xf32>
    %278 = arith.mulf %277, %277 : vector<16x32xf32>
    %cst_109 = arith.constant dense<0.000000e+00> : vector<16xf32>
    %279 = vector.multi_reduction <add>, %278, %cst_109 [1] : vector<16x32xf32> to vector<16xf32>
    %280 = vector.shape_cast %279 : vector<16xf32> to vector<16x1xf32>
    %cst_110 = arith.constant 3.200000e+01 : f32
    %281 = vector.broadcast %cst_110 : f32 to vector<16x1xf32>
    %282 = arith.divf %280, %281 : vector<16x1xf32>
    %283 = vector.broadcast %275 : vector<16x1xf32> to vector<16x32xf32>
    %284 = arith.subf %265, %283 : vector<16x32xf32>
    %cst_111 = arith.constant 9.99999974E-6 : f32
    %285 = vector.broadcast %cst_111 : f32 to vector<16x1xf32>
    %286 = arith.addf %282, %285 : vector<16x1xf32>
    %287 = math.rsqrt %286 : vector<16x1xf32>
    %288 = vector.broadcast %287 : vector<16x1xf32> to vector<16x32xf32>
    %289 = arith.mulf %284, %288 : vector<16x32xf32>
    %290 = vector.broadcast %268 : vector<1x32xf32> to vector<16x32xf32>
    %291 = arith.mulf %289, %290 : vector<16x32xf32>
    %292 = vector.broadcast %271 : vector<1x32xf32> to vector<16x32xf32>
    %293 = arith.addf %291, %292 : vector<16x32xf32>
    %c0_112 = arith.constant 0 : index
    %c0_113 = arith.constant 0 : index
    %c0_114 = arith.constant 0 : index
    %294 = vector.load %arg16[%c0_112, %c0_113, %c0_114] : memref<1x32x64xf32, #tpu.memory_space<vmem>>, vector<1x32x64xf32>
    %295 = vector.shape_cast %294 : vector<1x32x64xf32> to vector<32x64xf32>
    %cst_115 = arith.constant dense<0.000000e+00> : vector<16x64xf32>
    %296 = tpu.matmul %293, %295, %cst_115 {dimension_numbers = #tpu.dot_dimension_numbers<[1], [0], [0], [1], [0, 0, 1, 1], [], []>} : vector<16x32xf32>, vector<32x64xf32>, vector<16x64xf32> -> vector<16x64xf32>
    %c0_116 = arith.constant 0 : index
    %c0_117 = arith.constant 0 : index
    %c0_118 = arith.constant 0 : index
    %297 = vector.load %arg17[%c0_116, %c0_117, %c0_118] : memref<1x1x64xf32, #tpu.memory_space<vmem>>, vector<1x1x64xf32>
    %298 = vector.shape_cast %297 : vector<1x1x64xf32> to vector<1x64xf32>
    %299 = vector.broadcast %298 : vector<1x64xf32> to vector<16x64xf32>
    %300 = arith.addf %296, %299 : vector<16x64xf32>
    %cst_119 = arith.constant 0.000000e+00 : f32
    %301 = vector.broadcast %cst_119 : f32 to vector<16x64xf32>
    %302 = arith.maximumf %300, %301 : vector<16x64xf32>
    %c0_120 = arith.constant 0 : index
    %c0_121 = arith.constant 0 : index
    %c0_122 = arith.constant 0 : index
    %303 = vector.load %arg18[%c0_120, %c0_121, %c0_122] : memref<1x64x32xf32, #tpu.memory_space<vmem>>, vector<1x64x32xf32>
    %304 = vector.shape_cast %303 : vector<1x64x32xf32> to vector<64x32xf32>
    %cst_123 = arith.constant dense<0.000000e+00> : vector<16x32xf32>
    %305 = tpu.matmul %302, %304, %cst_123 {dimension_numbers = #tpu.dot_dimension_numbers<[1], [0], [0], [1], [0, 0, 1, 1], [], []>} : vector<16x64xf32>, vector<64x32xf32>, vector<16x32xf32> -> vector<16x32xf32>
    %c0_124 = arith.constant 0 : index
    %c0_125 = arith.constant 0 : index
    %c0_126 = arith.constant 0 : index
    %306 = vector.load %arg19[%c0_124, %c0_125, %c0_126] : memref<1x1x32xf32, #tpu.memory_space<vmem>>, vector<1x1x32xf32>
    %307 = vector.shape_cast %306 : vector<1x1x32xf32> to vector<1x32xf32>
    %308 = vector.broadcast %307 : vector<1x32xf32> to vector<16x32xf32>
    %309 = arith.addf %305, %308 : vector<16x32xf32>
    %310 = arith.addf %293, %309 : vector<16x32xf32>
    %c0_127 = arith.constant 0 : index
    %c0_128 = arith.constant 0 : index
    %c0_129 = arith.constant 0 : index
    %311 = vector.load %arg20[%c0_127, %c0_128, %c0_129] : memref<1x3x32xf32, #tpu.memory_space<vmem>>, vector<1x3x32xf32>
    %312 = vector.extract_strided_slice %311 {offsets = [0, 2, 0], sizes = [1, 1, 32], strides = [1, 1, 1]} : vector<1x3x32xf32> to vector<1x1x32xf32>
    %313 = vector.shape_cast %312 : vector<1x1x32xf32> to vector<1x32xf32>
    %c0_130 = arith.constant 0 : index
    %c0_131 = arith.constant 0 : index
    %c0_132 = arith.constant 0 : index
    %314 = vector.load %arg21[%c0_130, %c0_131, %c0_132] : memref<1x3x32xf32, #tpu.memory_space<vmem>>, vector<1x3x32xf32>
    %315 = vector.extract_strided_slice %314 {offsets = [0, 2, 0], sizes = [1, 1, 32], strides = [1, 1, 1]} : vector<1x3x32xf32> to vector<1x1x32xf32>
    %316 = vector.shape_cast %315 : vector<1x1x32xf32> to vector<1x32xf32>
    %cst_133 = arith.constant dense<0.000000e+00> : vector<16xf32>
    %317 = vector.multi_reduction <add>, %310, %cst_133 [1] : vector<16x32xf32> to vector<16xf32>
    %318 = vector.shape_cast %317 : vector<16xf32> to vector<16x1xf32>
    %cst_134 = arith.constant 3.200000e+01 : f32
    %319 = vector.broadcast %cst_134 : f32 to vector<16x1xf32>
    %320 = arith.divf %318, %319 : vector<16x1xf32>
    %321 = vector.broadcast %320 : vector<16x1xf32> to vector<16x32xf32>
    %322 = arith.subf %310, %321 : vector<16x32xf32>
    %323 = arith.mulf %322, %322 : vector<16x32xf32>
    %cst_135 = arith.constant dense<0.000000e+00> : vector<16xf32>
    %324 = vector.multi_reduction <add>, %323, %cst_135 [1] : vector<16x32xf32> to vector<16xf32>
    %325 = vector.shape_cast %324 : vector<16xf32> to vector<16x1xf32>
    %cst_136 = arith.constant 3.200000e+01 : f32
    %326 = vector.broadcast %cst_136 : f32 to vector<16x1xf32>
    %327 = arith.divf %325, %326 : vector<16x1xf32>
    %328 = vector.broadcast %320 : vector<16x1xf32> to vector<16x32xf32>
    %329 = arith.subf %310, %328 : vector<16x32xf32>
    %cst_137 = arith.constant 9.99999974E-6 : f32
    %330 = vector.broadcast %cst_137 : f32 to vector<16x1xf32>
    %331 = arith.addf %327, %330 : vector<16x1xf32>
    %332 = math.rsqrt %331 : vector<16x1xf32>
    %333 = vector.broadcast %332 : vector<16x1xf32> to vector<16x32xf32>
    %334 = arith.mulf %329, %333 : vector<16x32xf32>
    %335 = vector.broadcast %313 : vector<1x32xf32> to vector<16x32xf32>
    %336 = arith.mulf %334, %335 : vector<16x32xf32>
    %337 = vector.broadcast %316 : vector<1x32xf32> to vector<16x32xf32>
    %338 = arith.addf %336, %337 : vector<16x32xf32>
    %339 = vector.shape_cast %338 : vector<16x32xf32> to vector<2x8x32xf32>
    %c0_138 = arith.constant 0 : index
    %c0_139 = arith.constant 0 : index
    %c0_140 = arith.constant 0 : index
    %340 = vector.load %arg23[%c0_138, %c0_139, %c0_140] : memref<2x8x32xf32, #tpu.memory_space<vmem>>, vector<2x8x32xf32>
    tpu.vector_store %arg23[%c0_138, %c0_139, %c0_140], %339 {strides = array<i32>} : memref<2x8x32xf32, #tpu.memory_space<vmem>>, vector<2x8x32xf32>,
    %c1_i32 = arith.constant 1 : i32
    %341 = arith.cmpi eq, %arg0, %c1_i32 : i32
    %342 = arith.extui %341 : i1 to i32
    %c0_i32_141 = arith.constant 0 : i32
    %343 = arith.cmpi ne, %342, %c0_i32_141 : i32
    scf.if %343 {
      %c0_142 = arith.constant 0 : index
      %c0_143 = arith.constant 0 : index
      %344 = vector.load %arg4[%c0_142, %c0_143] : memref<32x128xf32, #tpu.memory_space<vmem>>, vector<32x128xf32>
      %cst_144 = arith.constant dense<0.000000e+00> : vector<16x128xf32>
      %345 = tpu.matmul %338, %344, %cst_144 {dimension_numbers = #tpu.dot_dimension_numbers<[1], [0], [0], [1], [0, 0, 1, 1], [], []>} : vector<16x32xf32>, vector<32x128xf32>, vector<16x128xf32> -> vector<16x128xf32>
      %c0_145 = arith.constant 0 : index
      %c0_146 = arith.constant 0 : index
      %346 = vector.load %arg5[%c0_145, %c0_146] : memref<1x128xf32, #tpu.memory_space<vmem>>, vector<1x128xf32>
      %347 = vector.broadcast %346 : vector<1x128xf32> to vector<16x128xf32>
      %348 = arith.addf %345, %347 : vector<16x128xf32>
      %349 = vector.shape_cast %348 : vector<16x128xf32> to vector<2x8x128xf32>
      %c0_147 = arith.constant 0 : index
      %c0_148 = arith.constant 0 : index
      %c0_149 = arith.constant 0 : index
      %350 = vector.load %arg22[%c0_147, %c0_148, %c0_149] : memref<2x8x128xf32, #tpu.memory_space<vmem>>, vector<2x8x128xf32>
      tpu.vector_store %arg22[%c0_147, %c0_148, %c0_149], %349 {strides = array<i32>} : memref<2x8x128xf32, #tpu.memory_space<vmem>>, vector<2x8x128xf32>,
    } else {
    }
    return
  }
  func.func @transform_0(%arg0: i32) -> (i32, i32, i32) {
    %c0_i32 = arith.constant 0 : i32
    %c0_i32_0 = arith.constant 0 : i32
    %c0_i32_1 = arith.constant 0 : i32
    %c0_i32_2 = arith.constant 0 : i32
    return %c0_i32, %c0_i32_0, %c0_i32_1 : i32, i32, i32
  }
  func.func @transform_1(%arg0: i32) -> (i32, i32) {
    %c0_i32 = arith.constant 0 : i32
    %c0_i32_0 = arith.constant 0 : i32
    %c0_i32_1 = arith.constant 0 : i32
    return %c0_i32, %c0_i32_0 : i32, i32
  }
  func.func @transform_2(%arg0: i32) -> (i32, i32, i32) {
    %c0_i32 = arith.constant 0 : i32
    %c0_i32_0 = arith.constant 0 : i32
    %c0_i32_1 = arith.constant 0 : i32
    %c0_i32_2 = arith.constant 0 : i32
    return %c0_i32, %c0_i32_0, %c0_i32_1 : i32, i32, i32
  }
  func.func @transform_3(%arg0: i32) -> (i32, i32) {
    %c0_i32 = arith.constant 0 : i32
    %c0_i32_0 = arith.constant 0 : i32
    %c0_i32_1 = arith.constant 0 : i32
    return %c0_i32, %c0_i32_0 : i32, i32
  }
  func.func @transform_4(%arg0: i32) -> (i32, i32) {
    %c0_i32 = arith.constant 0 : i32
    %c0_i32_0 = arith.constant 0 : i32
    %c0_i32_1 = arith.constant 0 : i32
    return %c0_i32, %c0_i32_0 : i32, i32
  }
  func.func @transform_5(%arg0: i32) -> (i32, i32, i32) {
    %c0_i32 = arith.constant 0 : i32
    %c0_i32_0 = arith.constant 0 : i32
    %c0_i32_1 = arith.constant 0 : i32
    return %arg0, %c0_i32, %c0_i32_0 : i32, i32, i32
  }
  func.func @transform_6(%arg0: i32) -> (i32, i32, i32) {
    %c0_i32 = arith.constant 0 : i32
    %c0_i32_0 = arith.constant 0 : i32
    %c0_i32_1 = arith.constant 0 : i32
    return %arg0, %c0_i32, %c0_i32_0 : i32, i32, i32
  }
  func.func @transform_7(%arg0: i32) -> (i32, i32, i32) {
    %c0_i32 = arith.constant 0 : i32
    %c0_i32_0 = arith.constant 0 : i32
    %c0_i32_1 = arith.constant 0 : i32
    return %arg0, %c0_i32, %c0_i32_0 : i32, i32, i32
  }
  func.func @transform_8(%arg0: i32) -> (i32, i32, i32) {
    %c0_i32 = arith.constant 0 : i32
    %c0_i32_0 = arith.constant 0 : i32
    %c0_i32_1 = arith.constant 0 : i32
    return %arg0, %c0_i32, %c0_i32_0 : i32, i32, i32
  }
  func.func @transform_9(%arg0: i32) -> (i32, i32, i32) {
    %c0_i32 = arith.constant 0 : i32
    %c0_i32_0 = arith.constant 0 : i32
    %c0_i32_1 = arith.constant 0 : i32
    return %arg0, %c0_i32, %c0_i32_0 : i32, i32, i32
  }
  func.func @transform_10(%arg0: i32) -> (i32, i32, i32) {
    %c0_i32 = arith.constant 0 : i32
    %c0_i32_0 = arith.constant 0 : i32
    %c0_i32_1 = arith.constant 0 : i32
    return %arg0, %c0_i32, %c0_i32_0 : i32, i32, i32
  }
  func.func @transform_11(%arg0: i32) -> (i32, i32, i32) {
    %c0_i32 = arith.constant 0 : i32
    %c0_i32_0 = arith.constant 0 : i32
    %c0_i32_1 = arith.constant 0 : i32
    return %arg0, %c0_i32, %c0_i32_0 : i32, i32, i32
  }
  func.func @transform_12(%arg0: i32) -> (i32, i32, i32) {
    %c0_i32 = arith.constant 0 : i32
    %c0_i32_0 = arith.constant 0 : i32
    %c0_i32_1 = arith.constant 0 : i32
    return %arg0, %c0_i32, %c0_i32_0 : i32, i32, i32
  }
  func.func @transform_13(%arg0: i32) -> (i32, i32, i32) {
    %c0_i32 = arith.constant 0 : i32
    %c0_i32_0 = arith.constant 0 : i32
    %c0_i32_1 = arith.constant 0 : i32
    return %arg0, %c0_i32, %c0_i32_0 : i32, i32, i32
  }
  func.func @transform_14(%arg0: i32) -> (i32, i32, i32) {
    %c0_i32 = arith.constant 0 : i32
    %c0_i32_0 = arith.constant 0 : i32
    %c0_i32_1 = arith.constant 0 : i32
    return %arg0, %c0_i32, %c0_i32_0 : i32, i32, i32
  }
  func.func @transform_15(%arg0: i32) -> (i32, i32, i32) {
    %c0_i32 = arith.constant 0 : i32
    %c0_i32_0 = arith.constant 0 : i32
    %c0_i32_1 = arith.constant 0 : i32
    return %arg0, %c0_i32, %c0_i32_0 : i32, i32, i32
  }
  func.func @transform_16(%arg0: i32) -> (i32, i32, i32) {
    %c0_i32 = arith.constant 0 : i32
    %c0_i32_0 = arith.constant 0 : i32
    %c0_i32_1 = arith.constant 0 : i32
    return %arg0, %c0_i32, %c0_i32_0 : i32, i32, i32
  }
  func.func @transform_17(%arg0: i32) -> (i32, i32, i32) {
    %c0_i32 = arith.constant 0 : i32
    %c0_i32_0 = arith.constant 0 : i32
    %c0_i32_1 = arith.constant 0 : i32
    return %arg0, %c0_i32, %c0_i32_0 : i32, i32, i32
  }
  func.func @transform_18(%arg0: i32) -> (i32, i32, i32) {
    %c0_i32 = arith.constant 0 : i32
    %c0_i32_0 = arith.constant 0 : i32
    %c0_i32_1 = arith.constant 0 : i32
    return %arg0, %c0_i32, %c0_i32_0 : i32, i32, i32
  }
  func.func @transform_19(%arg0: i32) -> (i32, i32, i32) {
    %c0_i32 = arith.constant 0 : i32
    %c0_i32_0 = arith.constant 0 : i32
    %c0_i32_1 = arith.constant 0 : i32
    return %arg0, %c0_i32, %c0_i32_0 : i32, i32, i32
  }
  func.func @transform_20(%arg0: i32) -> (i32, i32, i32) {
    %c0_i32 = arith.constant 0 : i32
    %c0_i32_0 = arith.constant 0 : i32
    %c0_i32_1 = arith.constant 0 : i32
    return %arg0, %c0_i32, %c0_i32_0 : i32, i32, i32
  }
  func.func @transform_21(%arg0: i32) -> (i32, i32, i32) {
    %c0_i32 = arith.constant 0 : i32
    %c0_i32_0 = arith.constant 0 : i32
    %c0_i32_1 = arith.constant 0 : i32
    %c0_i32_2 = arith.constant 0 : i32
    return %c0_i32, %c0_i32_0, %c0_i32_1 : i32, i32, i32
  }
}

</mosaic_0001>

<bundles_post_ra>
// kernel: decoder_forward.1
= control target key start
LH: loop header
LB: loop body
LE: loop exit
PB: predicated region body
PF: predicated region fallthrough
CT: control target
= control target key end

     0   :  { %s6464_s0 = inlined_call_operand.vmem [shape: f32[2,8,32], index: 0, kind: input, shape index: {}]   ;;  %s6465_s1 = inlined_call_operand.vmem [shape: f32[8,32], index: 1, kind: input, shape index: {}]   ;;  %s6466_s2 = inlined_call_operand.vmem [shape: f32[2,8,32], index: 2, kind: input, shape index: {}]   ;;  %s6467_s3 = inlined_call_operand.vmem [shape: f32[32,128], index: 3, kind: input, shape index: {}]   ;;  %s6468_s4 = inlined_call_operand.vmem [shape: f32[1,128], index: 4, kind: input, shape index: {}]   ;;  %s6469_s5 = inlined_call_operand.vmem [shape: f32[2,32,96], index: 5, kind: input, shape index: {}]   ;;  %s6470_s6 = inlined_call_operand.vmem [shape: f32[2,1,96], index: 6, kind: input, shape index: {}]   ;;  %s6471_s7 = inlined_call_operand.vmem [shape: f32[2,32,32], index: 7, kind: input, shape index: {}]   ;;  %s6472_s8 = inlined_call_operand.vmem [shape: f32[2,1,32], index: 8, kind: input, shape index: {}]   ;;  %s6473_s9 = inlined_call_operand.vmem [shape: f32[2,32,32], index: 9, kind: input, shape index: {}]   ;;  %s6474_s10 = inlined_call_operand.vmem [shape: f32[2,1,32], index: 10, kind: input, shape index: {}]   ;;  %s6475_s11 = inlined_call_operand.vmem [shape: f32[2,32,64], index: 11, kind: input, shape index: {}]   ;;  %s6476_s12 = inlined_call_operand.vmem [shape: f32[2,1,64], index: 12, kind: input, shape index: {}]   ;;  %s6477_s13 = inlined_call_operand.vmem [shape: f32[2,32,32], index: 13, kind: input, shape index: {}]   ;;  %s6478_s14 = inlined_call_operand.vmem [shape: f32[2,1,32], index: 14, kind: input, shape index: {}]   ;;  %s6479_s15 = inlined_call_operand.vmem [shape: f32[2,32,64], index: 15, kind: input, shape index: {}]   ;;  %s6480_s16 = inlined_call_operand.vmem [shape: f32[2,1,64], index: 16, kind: input, shape index: {}]   ;;  %s6481_s17 = inlined_call_operand.vmem [shape: f32[2,64,32], index: 17, kind: input, shape index: {}]   ;;  %s6482_s18 = inlined_call_operand.vmem [shape: f32[2,1,32], index: 18, kind: input, shape index: {}]   ;;  %s6483_s19 = inlined_call_operand.vmem [shape: f32[2,3,32], index: 19, kind: input, shape index: {}]   ;;  %s6484_s20 = inlined_call_operand.vmem [shape: f32[2,3,32], index: 20, kind: input, shape index: {}]   ;;  %s6485_s21 = inlined_call_operand.vmem [shape: f32[2,8,128], index: 21, kind: output, shape index: {}]  }
   0x1   :  { %6492 = sst [smem:[#allocation5_spill]] %s6464_s0 }
   0x2   :  { %6493 = sst [smem:[#allocation6_spill]] %s6465_s1 }
   0x3   :  { %6494 = sst [smem:[#allocation7_spill]] %s6466_s2  ;;  %s5886_s2 = smov 0  }
   0x4   :  { %6495 = sst [smem:[#allocation8_spill]] %s6467_s3 }
   0x5   :  { %6496 = sst [smem:[#allocation9_spill]] %s6468_s4 }
   0x6   :  { %6497 = sst [smem:[#allocation10_spill]] %s6469_s5 }
   0x7   :  { %6498 = sst [smem:[#allocation11_spill]] %s6470_s6 }
   0x8   :  { %6499 = sst [smem:[#allocation12_spill]] %s6471_s7 }
   0x9   :  { %6500 = sst [smem:[#allocation13_spill]] %s6473_s9 }
   0xa   :  { %6501 = sst [smem:[#allocation14_spill]] %s6475_s11 }
   0xb   :  { %6502 = sst [smem:[#allocation15_spill]] %s6477_s13 }
   0xc   :  { %6503 = sst [smem:[#allocation16_spill]] %s6478_s14 }
   0xd   :  { %6504 = sst [smem:[#allocation17_spill]] %s6479_s15 }
   0xe   :  { %6505 = sst [smem:[#allocation18_spill]] %s6484_s20 }
   0xf   :  { %6506 = sst [smem:[#allocation19_spill]] %s6485_s21 }
  0x10 LB: > { %6507 = sst [smem:[#allocation3_spill]] %s5760_s2  ;;  %s5892_s25 = sadd.s32 4294967295, %s5760_s2   ;;  %s5760_s2 = sphi %s5886_s2, %s31_s2  }
  0x11   : > { %6508 = sst [smem:[#allocation4_spill]] %s5892_s25  ;;  %p5142_p0 = scmp.ge.s32.totalorder %s5760_s2, 1 }
  0x12   : > { %p716_p1 = scmp.lt.s32.totalorder %s5760_s2, 3 }
  0x14   : > { %p717_p2 = pnand %p5142_p0, %p716_p1 }
  0x15   : > { %p830_p3 = scmp.lt.s32.totalorder (!%p717_p2), %s5892_s25, 1  ;;  %s6510_s30 = sld [smem:[#allocation10_spill]] (!%p717_p2) }
  0x16   : > { %720 = sbr.rel (%p717_p2) target bundleno = 7770 (0x1e5a), region = 104  ;;  %s6511_s7 = sld [smem:[#allocation12_spill]] (!%p717_p2) }
  0x17   : > { %s6512_s9 = sld [smem:[#allocation13_spill]] (!%p717_p2) }
  0x18   : > { %s6513_s11 = sld [smem:[#allocation14_spill]] (!%p717_p2) }
  0x19   : > { %s6514_s13 = sld [smem:[#allocation15_spill]] (!%p717_p2) }
  0x1a   : > { %s6516_s15 = sld [smem:[#allocation17_spill]] (!%p717_p2) }
  0x1b   : > { %s5898_s26 = scalar_select %p830_p3, %s5892_s25, 1 }
  0x1c   : > { %s6517_s4 = sld [smem:[#allocation18_spill]] }
  0x1d   : > { %s5247_s27 = sshll.u32 %s5898_s26, 5  ;;  %s5253_s22 = sshll.u32 %s5898_s26, 6 }
  0x1e   : > { %s5908_s5 = scalar_lea.vmem %s6510_s30, %s5247_s27  ;;  %s5913_s1 = scalar_lea.vmem %s6511_s7, %s5247_s27 }
  0x1f   : > { %s5922_s3 = scalar_lea.vmem %s6512_s9, %s5247_s27  ;;  %s5931_s6 = scalar_lea.vmem %s6513_s11, %s5247_s27 }
  0x20   : > { %s5940_s21 = scalar_lea.vmem %s6514_s13, %s5247_s27  ;;  %s5949_s0 = scalar_lea.vmem %s6516_s15, %s5247_s27 }
  0x21   : > { %s5959_s2 = scalar_lea.vmem %s6481_s17, %s5253_s22  ;;  %s5157_s25 = sshll.u32 %s5898_s26, 2 }
  0x22   : > { %s5969_s27 = scalar_lea.vmem %s6483_s19, %s5157_s25  ;;  %s5974_s30 = scalar_lea.vmem %s6517_s4, %s5157_s25 }
  0x23   : > { %s6518_s11 = sld [smem:[#allocation4_spill]] }
  0x29   : > { %p5159_p4 = scmp.ne.s32.totalorder %s6518_s11, 0 }
  0x2a   : > { %s6519_s23 = sld [smem:[#allocation5_spill]] (!%p5159_p4) }
  0x2b   : > { %897 = sbr.rel (%p5159_p4) target bundleno = 54 (0x36), region = 108  ;;  %s6520_s20 = sld [smem:[#allocation6_spill]] (!%p5159_p4) }
  0x30   : > { %v898_v0 = vld [vmem:[%s6519_s23] sm:$0xff]  ;;  %v899_v2 = vld [vmem:[%s6519_s23 + $0x8] sm:$0xff]  ;;  %vm905_vm0 = vcmask 261120  }
  0x31   : > { %v902_v1 = vld [vmem:[%s6520_s20] sm:$0xff]  ;;  %v900_v3 = vmul.f32 5.656854, %v898_v0  ;;  %v901_v4 = vmul.f32 5.656854, %v899_v2 }
  0x33   : > { %v903_v5 = vadd.f32 %v902_v1, %v900_v3  ;;  %v904_v6 = vadd.f32 %v902_v1, %v901_v4 }
  0x35   : > { %906 = vst.msk [vmem:[#allocation2] sm:$0xff] %vm905_vm0, %v903_v5  ;;  %907 = vst.msk [vmem:[#allocation2 + $0x8] sm:$0xff] %vm905_vm0, %v904_v6 }
  0x36 PF: > { %v915_v7 = vld [vmem:[%s5908_s5 + $0x18] sm:$0xff]  ;;  %v914_v8 = vld [vmem:[%s5908_s5 + $0x10] sm:$0xff]  ;;  %vm923_vm1 = vcmask 261120   ;;  %v913_v10 = vld [vmem:[%s5908_s5 + $0x8] sm:$0xff]  ;;  %v5762_v13 = vmov 0.0   ;;  %vm5763_vm2 = vmmov 0   ;;  %v1009_v21 = vlaneseq }
  0x37   : > { %5382 = vmatprep.subr.mxu0 %v915_v7  ;;  %v912_v11 = vld [vmem:[%s5908_s5] sm:$0xff]  ;;  %5398 = vmatprep.subr.mxu1 %v5762_v13  ;;  %s6521_s15 = sld [smem:[#allocation11_spill]]  ;;  %s5764_s20 = smov 96   ;;  %vm1018_vm3 = vcmask 64512   ;;  %v5765_v25 = vmov -1e+09  }
  0x38   : > { %5383 = vmatpush3.msra.mxu0 %v915_v7  ;;  %5400 = vmatprep.mubr.msk.f32.mxu1 %vm5763_vm2, %v5762_v13  ;;  %v6029_v22 = vshrl.u32 %v1009_v21, 7  ;;  %v1012_v23 = vand.u32 127, %v1009_v21  ;;  %s5766_s25 = smov 64   ;;  %s5767_s29 = smov 120   ;;  %vm4730_vm5 = vcmask 523264  }
  0x39   : > { %5384 = vmatprep.subr.mxu0 %v914_v8  ;;  %s5768_s28 = smov 88   ;;  %s5769_s4 = smov 56  }
  0x3a   : > { %5385 = vmatpush3.msra.mxu0 %v914_v8  ;;  %vm1013_vm4 = vcmp.le.s32.totalorder %v1012_v23, %v6029_v22  ;;  %s5770_s7 = smov 112   ;;  %s5771_s22 = smov 80  }
  0x3b   : > { %5386 = vmatprep.subr.mxu0 %v913_v10  ;;  %v6032_v26 = vsel %vm1013_vm4, 0.0, %v5765_v25  ;;  %v1005_v25 = vld [vmem:[%s5913_s1] sm:$0xff]  ;;  %s5772_s13 = smov 48   ;;  %s5773_s24 = smov 72  }
  0x3c   : > { %v5988_v9 = vld [vmem:[#allocation2] sm:$0xff]  ;;  %5387 = vmatpush3.msra.mxu0 %v913_v10  ;;  %v5994_v12 = vld [vmem:[#allocation2 + $0x8] sm:$0xff]  ;;  %s5774_s9 = smov 104   ;;  %s5775_s11 = smov 40  }
  0x3d   : > { %5390 = vmatprep.mubr.msk.f32.mxu0 %vm923_vm1, %v5988_v9  ;;  %5388 = vmatprep.subr.mxu0 %v912_v11  ;;  %s6522_s5 = scalar_lea.vmem %s6521_s15, %s5898_s26  ;;  %s6523_s15 = scalar_lea.vmem %s6472_s8, %s5898_s26 }
  0x3e   : > { %5389 = vmatpush3.msra.mxu0 %v912_v11  ;;  %v5160_v15 = vld [vmem:[%s6522_s5] ss:$0 sm:$0xff]  ;;  %s6526_s5 = scalar_lea.vmem %s6474_s10, %s5898_s26 }
  0x3f   : > { %5391 = vmatmul.mubr.msk.f32.vlgmr.msra.gmra.mxu0 %vm923_vm1, %v5994_v12  ;;  %5393 = vmatprep.subr.mxu0 %v5762_v13 }
  0x40   : > { %5395 = vmatprep.mubr.msk.f32.mxu0 %vm5763_vm2, %v5762_v13 }
  0xff   : > { %v5392_v14 = vpop.f32.mrf.mxu0 }
 0x100   : > { %v6013_v18 = vadd.f32 %v5392_v14, %v5160_v15 }
 0x101   : > { %v996_v16 = vpop.f32.mrf.mxu0 }
 0x102   : > { %v6009_v17 = vadd.f32 %v5160_v15, %v996_v16 }
 0x104   : > { %1016 = vrot.lane.b32.xlu0 %v6009_v17, %s5764_s20 }
 0x108   : > { %1094 = vrot.lane.b32.xlu0 %v6013_v18, %s5764_s20 }
 0x176   : > { %v1017_v19 = vpop.permute.xlu0 %1016 }
 0x177   : > { %5394 = vmatpush3.xpose.msk.msra.mxu0 %vm1018_vm3, %v1017_v19 }
 0x178   : > { %5403 = vmatprep.subr.mxu0 %v5762_v13 }
 0x17a   : > { %5396 = vmatmul.mubr.msk.f32.vlgmr.msra.gmra.mxu0 %vm1018_vm3, %v6009_v17  ;;  %v1095_v20 = vpop.permute.xlu0 %1094 }
 0x17b   : > { %5399 = vmatpush3.xpose.msk.msra.mxu1 %vm1018_vm3, %v1095_v20  ;;  %5405 = vmatprep.mubr.msk.f32.mxu0 %vm5763_vm2, %v5762_v13 }
 0x17c   : > { %5408 = vmatprep.subr.mxu1 %v5762_v13 }
 0x17e   : > { %5401 = vmatmul.mubr.msk.f32.vlgmr.msra.gmra.mxu1 %vm1018_vm3, %v6013_v18 }
 0x17f   : > { %5410 = vmatprep.mubr.msk.f32.mxu1 %vm5763_vm2, %v5762_v13 }
 0x23a   : > { %v1089_v24 = vpop.f32.mrf.mxu0 }
 0x23b   : > { %v1170_v27 = vmul.f32 0.35355338, %v1089_v24 }
 0x23c   : > { %v5397_v28 = vpop.f32.mrf.mxu0 }
 0x23d   : > { %v1172_v29 = vadd.f32 %v1170_v27, %v6032_v26 }
 0x23e   : > { %v1166_v30 = vpop.f32.mrf.mxu1 }
 0x23f   : > { %v1171_v31 = vmul.f32 0.35355338, %v1166_v30  ;;  %v1174_v32 = vsel %vm1018_vm3, %v1172_v29, -inf }
 0x240   : > { %1175 = vmax.xlane.f32.xlu1 %v1174_v32  ;;  %v5402_v33 = vpop.f32.mrf.mxu1 }
 0x241   : > { %v1173_v34 = vadd.f32 %v1171_v31, %v6032_v26 }
 0x243   : > { %v1177_v35 = vsel %vm1018_vm3, %v1173_v34, -inf }
 0x244   : > { %1178 = vmax.xlane.f32.xlu1 %v1177_v35 }
 0x2c9   : > { %v1176_v36 = vpop.xlane.xlu1 %1175 }
 0x2ca   : > { %v1180_v37 = vsub.f32 %v1172_v29, %v1176_v36 }
 0x2cc   : > { %v1182_v38 = vmul.f32 1.442695, %v1180_v37  ;;  %v1006_v37 = vld [vmem:[%s5913_s1 + $0x8] sm:$0xff] }
 0x2cd   : > { %v1179_v39 = vpop.xlane.xlu1 %1178 }
 0x2ce   : > { %5678 = vpow2.f32 %v1182_v38  ;;  %v1181_v40 = vsub.f32 %v1173_v34, %v1179_v39 }
 0x2d0   : > { %v1184_v41 = vmul.f32 1.442695, %v1181_v40 }
 0x2d2   : > { %5680 = vpow2.f32 %v1184_v41 }
 0x2db   : > { %v5679_v42 = vpop.eup %5678 }
 0x2dc   : > { %v1186_v43 = vsel %vm1018_vm3, %v5679_v42, 0.0 }
 0x2dd   : > { %1187 = vadd.xlane.f32.xlu0 %v1186_v43 }
 0x2df   : > { %v5681_v44 = vpop.eup %5680 }
 0x2e0   : > { %v1189_v45 = vsel %vm1018_vm3, %v5681_v44, 0.0 }
 0x2e1   : > { %1190 = vadd.xlane.f32.xlu1 %v1189_v45 }
 0x2f2   : > { %1196 = vrot.lane.b32.xlu1 %v6009_v17, %s5766_s25 }
 0x2f3   : > { %1348 = vrot.lane.b32.xlu0 %v6009_v17, %s5767_s29 }
 0x2f6   : > { %1272 = vrot.lane.b32.xlu1 %v6013_v18, %s5766_s25 }
 0x2fa   : > { %1350 = vrot.lane.b32.xlu1 %v6009_v17, %s5768_s28 }
 0x2fe   : > { %1428 = vrot.lane.b32.xlu1 %v6013_v18, %s5768_s28 }
 0x302   : > { %1426 = vrot.lane.b32.xlu1 %v6013_v18, %s5767_s29 }
 0x366   : > { %v1188_v46 = vpop.xlane.xlu0 %1187 }
 0x367   : > { %5682 = vrcp.f32 %v1188_v46 }
 0x36a   : > { %v1191_v47 = vpop.xlane.xlu1 %1190  ;;  %v1349_v55 = vpop.permute.xlu0 %1348 }
 0x36b   : > { %5684 = vrcp.f32 %v1191_v47 }
 0x36e   : > { %v1197_v48 = vpop.permute.xlu1 %1196 }
 0x36f   : > { %5404 = vmatpush3.msra.mxu0 %v1197_v48 }
 0x370   : > { %5413 = vmatprep.subr.mxu0 %v5762_v13 }
 0x372   : > { %v1273_v49 = vpop.permute.xlu1 %1272 }
 0x373   : > { %5409 = vmatpush3.msra.mxu1 %v1273_v49 }
 0x374   : > { %v5683_v50 = vpop.eup %5682  ;;  %5418 = vmatprep.subr.mxu1 %v5762_v13 }
 0x375   : > { %v1194_v51 = vmul.f32 %v5683_v50, %v5679_v42 }
 0x376   : > { %v1351_v52 = vpop.permute.xlu1 %1350 }
 0x377   : > { %5406 = vmatmul.mubr.msk.f32.vlgmr.msra.gmra.mxu0 %vm1018_vm3, %v1194_v51 }
 0x378   : > { %v5685_v53 = vpop.eup %5684  ;;  %5414 = vmatpush3.xpose.msk.msra.mxu0 %vm1018_vm3, %v1351_v52  ;;  %5415 = vmatprep.mubr.msk.f32.mxu0 %vm5763_vm2, %v5762_v13 }
 0x379   : > { %v1195_v54 = vmul.f32 %v5685_v53, %v5681_v44  ;;  %5423 = vmatprep.subr.mxu0 %v5762_v13 }
 0x37a   : > { %v1429_v56 = vpop.permute.xlu1 %1428 }
 0x37b   : > { %5411 = vmatmul.mubr.msk.f32.vlgmr.msra.gmra.mxu1 %vm1018_vm3, %v1195_v54  ;;  %5416 = vmatmul.mubr.msk.f32.vlgmr.msra.gmra.mxu0 %vm1018_vm3, %v1349_v55 }
 0x37c   : > { %5419 = vmatpush3.xpose.msk.msra.mxu1 %vm1018_vm3, %v1429_v56  ;;  %5420 = vmatprep.mubr.msk.f32.mxu1 %vm5763_vm2, %v5762_v13 }
 0x37d   : > { %5428 = vmatprep.subr.mxu1 %v5762_v13  ;;  %5425 = vmatprep.mubr.msk.f32.mxu0 %vm5763_vm2, %v5762_v13 }
 0x37e   : > { %v1427_v57 = vpop.permute.xlu1 %1426 }
 0x37f   : > { %5421 = vmatmul.mubr.msk.f32.vlgmr.msra.gmra.mxu1 %vm1018_vm3, %v1427_v57 }
 0x380   : > { %5430 = vmatprep.mubr.msk.f32.mxu1 %vm5763_vm2, %v5762_v13 }
 0x437   : > { %v1268_v58 = vpop.f32.mrf.mxu0 }
 0x439   : > { %v5407_v59 = vpop.f32.mrf.mxu0 }
 0x43b   : > { %v1344_v60 = vpop.f32.mrf.mxu1  ;;  %v1422_v61 = vpop.f32.mrf.mxu0 }
 0x43c   : > { %v1504_v62 = vmul.f32 0.35355338, %v1422_v61 }
 0x43d   : > { %v5412_v63 = vpop.f32.mrf.mxu1  ;;  %v5417_v0 = vpop.f32.mrf.mxu0 }
 0x43e   : > { %v1506_v1 = vadd.f32 %v1504_v62, %v6032_v26 }
 0x43f   : > { %v1500_v2 = vpop.f32.mrf.mxu1 }
 0x440   : > { %v1505_v3 = vmul.f32 0.35355338, %v1500_v2  ;;  %v1508_v4 = vsel %vm1018_vm3, %v1506_v1, -inf }
 0x441   : > { %v5422_v5 = vpop.f32.mrf.mxu1  ;;  %1509 = vmax.xlane.f32.xlu1 %v1508_v4 }
 0x442   : > { %v1507_v6 = vadd.f32 %v1505_v3, %v6032_v26 }
 0x444   : > { %v1511_v7 = vsel %vm1018_vm3, %v1507_v6, -inf }
 0x445   : > { %1512 = vmax.xlane.f32.xlu0 %v1511_v7 }
 0x45b   : > { %1606 = vrot.lane.b32.xlu0 %v6013_v18, %s5769_s4 }
 0x45f   : > { %1844 = vrot.lane.b32.xlu0 %v6009_v17, %s5770_s7 }
 0x4ca   : > { %v1510_v8 = vpop.xlane.xlu1 %1509 }
 0x4cb   : > { %v1514_v10 = vsub.f32 %v1506_v1, %v1510_v8 }
 0x4cd   : > { %v1516_v15 = vmul.f32 1.442695, %v1514_v10 }
 0x4ce   : > { %v1513_v11 = vpop.xlane.xlu0 %1512 }
 0x4cf   : > { %v1515_v14 = vsub.f32 %v1507_v6, %v1513_v11 }
 0x4d1   : > { %v1518_v16 = vmul.f32 1.442695, %v1515_v14 }
 0x4d2   : > { %v1607_v19 = vpop.permute.xlu0 %1606 }
 0x4d3   : > { %5686 = vpow2.f32 %v1518_v16  ;;  %5429 = vmatpush3.msra.mxu1 %v1607_v19  ;;  %v1007_v16 = vld [vmem:[%s5913_s1 + $0x10] sm:$0xff] }
 0x4d4   : > { %5688 = vpow2.f32 %v1516_v15  ;;  %5438 = vmatprep.subr.mxu1 %v1005_v25 }
 0x4d6   : > { %v1845_v45 = vpop.permute.xlu0 %1844 }
 0x4e0   : > { %v5687_v20 = vpop.eup %5686 }
 0x4e1   : > { %v1523_v21 = vsel %vm1018_vm3, %v5687_v20, 0.0  ;;  %v5689_v23 = vpop.eup %5688 }
 0x4e2   : > { %1524 = vadd.xlane.f32.xlu1 %v1523_v21  ;;  %v1520_v24 = vsel %vm1018_vm3, %v5689_v23, 0.0 }
 0x4e6   : > { %1521 = vadd.xlane.f32.xlu1 %v1520_v24 }
 0x4f7   : > { %1530 = vrot.lane.b32.xlu1 %v6009_v17, %s5769_s4  ;;  %s6524_s4 = sld [smem:[#allocation7_spill]] }
 0x4fb   : > { %1846 = vrot.lane.b32.xlu1 %v6009_v17, %s5771_s22 }
 0x4ff   : > { %1924 = vrot.lane.b32.xlu1 %v6013_v18, %s5771_s22 }
 0x503   : > { %1922 = vrot.lane.b32.xlu1 %v6013_v18, %s5770_s7 }
 0x56b   : > { %v1525_v27 = vpop.xlane.xlu1 %1524 }
 0x56c   : > { %5690 = vrcp.f32 %v1525_v27 }
 0x56f   : > { %v1522_v28 = vpop.xlane.xlu1 %1521 }
 0x570   : > { %5692 = vrcp.f32 %v1522_v28 }
 0x573   : > { %v1531_v29 = vpop.permute.xlu1 %1530 }
 0x574   : > { %5424 = vmatpush3.msra.mxu0 %v1531_v29 }
 0x575   : > { %5433 = vmatprep.subr.mxu0 %v1006_v37 }
 0x577   : > { %v1847_v30 = vpop.permute.xlu1 %1846 }
 0x579   : > { %v5691_v31 = vpop.eup %5690 }
 0x57a   : > { %v1529_v32 = vmul.f32 %v5691_v31, %v5687_v20 }
 0x57b   : > { %v1925_v34 = vpop.permute.xlu1 %1924 }
 0x57c   : > { %5431 = vmatmul.mubr.msk.f32.vlgmr.msra.gmra.mxu1 %vm1018_vm3, %v1529_v32 }
 0x57d   : > { %v5693_v33 = vpop.eup %5692  ;;  %5440 = vmatprep.mubr.msk.f32.mxu1 %vm1018_vm3, %v1268_v58  ;;  %5439 = vmatpush3.msra.mxu1 %v1005_v25 }
 0x57e   : > { %5448 = vmatprep.subr.mxu1 %v5762_v13  ;;  %v1528_v35 = vmul.f32 %v5693_v33, %v5689_v23 }
 0x57f   : > { %v1923_v36 = vpop.permute.xlu1 %1922 }
 0x580   : > { %5426 = vmatmul.mubr.msk.f32.vlgmr.msra.gmra.mxu0 %vm1018_vm3, %v1528_v35  ;;  %5441 = vmatmul.mubr.msk.f32.vlgmr.msra.gmra.mxu1 %vm1018_vm3, %v1344_v60 }
 0x581   : > { %5449 = vmatpush3.xpose.msk.msra.mxu1 %vm1018_vm3, %v1925_v34  ;;  %5450 = vmatprep.mubr.msk.f32.mxu1 %vm5763_vm2, %v5762_v13 }
 0x582   : > { %5458 = vmatprep.subr.mxu1 %v5762_v13  ;;  %5434 = vmatpush3.msra.mxu0 %v1006_v37 }
 0x583   : > { %5443 = vmatprep.subr.mxu0 %v5762_v13 }
 0x584   : > { %5451 = vmatmul.mubr.msk.f32.vlgmr.msra.gmra.mxu1 %vm1018_vm3, %v1923_v36 }
 0x585   : > { %5460 = vmatprep.mubr.msk.f32.mxu1 %vm5763_vm2, %v5762_v13 }
 0x63c   : > { %v1678_v38 = vpop.f32.mrf.mxu1 }
 0x63e   : > { %v5432_v39 = vpop.f32.mrf.mxu1 }
 0x640   : > { %v1602_v40 = vpop.f32.mrf.mxu0  ;;  %v6099_v41 = vpop.f32.mrf.mxu1 }
 0x641   : > { %5435 = vmatprep.mubr.msk.f32.mxu0 %vm1018_vm3, %v1602_v40 }
 0x642   : > { %v5427_v42 = vpop.f32.mrf.mxu0  ;;  %5436 = vmatmul.mubr.msk.f32.vlgmr.msra.gmra.mxu0 %vm1018_vm3, %v1678_v38  ;;  %v6103_v43 = vpop.f32.mrf.mxu1 }
 0x643   : > { %5444 = vmatpush3.xpose.msk.msra.mxu0 %vm1018_vm3, %v1847_v30  ;;  %5445 = vmatprep.mubr.msk.f32.mxu0 %vm5763_vm2, %v5762_v13 }
 0x644   : > { %v1996_v44 = vpop.f32.mrf.mxu1  ;;  %5453 = vmatprep.subr.mxu0 %v5762_v13 }
 0x645   : > { %v2001_v46 = vmul.f32 0.35355338, %v1996_v44 }
 0x646   : > { %5446 = vmatmul.mubr.msk.f32.vlgmr.msra.gmra.mxu0 %vm1018_vm3, %v1845_v45  ;;  %v5452_v47 = vpop.f32.mrf.mxu1 }
 0x647   : > { %v2003_v48 = vadd.f32 %v2001_v46, %v6032_v26  ;;  %5455 = vmatprep.mubr.msk.f32.mxu0 %vm5763_vm2, %v5762_v13 }
 0x649   : > { %v2007_v49 = vsel %vm1018_vm3, %v2003_v48, -inf }
 0x64a   : > { %2008 = vmax.xlane.f32.xlu1 %v2007_v49 }
 0x65b   : > { %2026 = vrot.lane.b32.xlu1 %v6009_v17, %s5772_s13 }
 0x65f   : > { %2263 = vrot.lane.b32.xlu1 %v6009_v17, %s5773_s24 }
 0x663   : > { %2341 = vrot.lane.b32.xlu1 %v6013_v18, %s5773_s24 }
 0x667   : > { %2339 = vrot.lane.b32.xlu1 %v6013_v18, %s5774_s9 }
 0x6d3   : > { %v2009_v50 = vpop.xlane.xlu1 %2008 }
 0x6d4   : > { %v2011_v52 = vsub.f32 %v2003_v48, %v2009_v50 }
 0x6d6   : > { %v2014_v53 = vmul.f32 1.442695, %v2011_v52 }
 0x6d7   : > { %v2027_v51 = vpop.permute.xlu1 %2026 }
 0x6d8   : > { %5454 = vmatpush3.msra.mxu0 %v2027_v51  ;;  %5694 = vpow2.f32 %v2014_v53 }
 0x6d9   : > { %5463 = vmatprep.subr.mxu0 %v1007_v16 }
 0x6db   : > { %v2264_v10 = vpop.permute.xlu1 %2263 }
 0x6df   : > { %v2342_v28 = vpop.permute.xlu1 %2341 }
 0x6e3   : > { %v2340_v31 = vpop.permute.xlu1 %2339 }
 0x6e5   : > { %v5695_v61 = vpop.eup %5694 }
 0x6e6   : > { %v2019_v62 = vsel %vm1018_vm3, %v5695_v61, 0.0 }
 0x702   : > { %v6122_v54 = vpop.f32.mrf.mxu0 }
 0x703   : > { %v1841_v37 = vadd.f32 %v6099_v41, %v6122_v54 }
 0x704   : > { %v6124_v55 = vpop.f32.mrf.mxu0 }
 0x705   : > { %v1836_v39 = vadd.f32 %v6103_v43, %v6124_v55 }
 0x706   : > { %v1918_v56 = vpop.f32.mrf.mxu0 }
 0x707   : > { %v2000_v57 = vmul.f32 0.35355338, %v1918_v56 }
 0x708   : > { %v5447_v58 = vpop.f32.mrf.mxu0 }
 0x709   : > { %v2002_v59 = vadd.f32 %v2000_v57, %v6032_v26 }
 0x70b   : > { %v2004_v60 = vsel %vm1018_vm3, %v2002_v59, -inf }
 0x70c   : > { %2005 = vmax.xlane.f32.xlu0 %v2004_v60 }
 0x710   : > { %2020 = vadd.xlane.f32.xlu0 %v2019_v62 }
 0x795   : > { %v2006_v63 = vpop.xlane.xlu0 %2005 }
 0x796   : > { %v2010_v0 = vsub.f32 %v2002_v59, %v2006_v63 }
 0x798   : > { %v2012_v1 = vmul.f32 1.442695, %v2010_v0  ;;  %v5195_v0 = vld [vmem:[%s6523_s15] ss:$0 sm:$0xff] }
 0x799   : > { %v2021_v4 = vpop.xlane.xlu0 %2020 }
 0x79a   : > { %5696 = vpow2.f32 %v2012_v1 }
 0x79b   : > { %5698 = vrcp.f32 %v2021_v4 }
 0x7a7   : > { %v5697_v2 = vpop.eup %5696 }
 0x7a8   : > { %v2016_v3 = vsel %vm1018_vm3, %v5697_v2, 0.0  ;;  %v5699_v6 = vpop.eup %5698 }
 0x7a9   : > { %2017 = vadd.xlane.f32.xlu0 %v2016_v3  ;;  %v2025_v8 = vmul.f32 %v5699_v6, %v5695_v61 }
 0x7bf   : > { %2102 = vrot.lane.b32.xlu0 %v6013_v18, %s5772_s13 }
 0x7c3   : > { %2261 = vrot.lane.b32.xlu0 %v6009_v17, %s5774_s9 }
 0x832   : > { %v2018_v5 = vpop.xlane.xlu0 %2017 }
 0x833   : > { %5700 = vrcp.f32 %v2018_v5 }
 0x836   : > { %v2103_v7 = vpop.permute.xlu0 %2102 }
 0x837   : > { %5459 = vmatpush3.msra.mxu1 %v2103_v7 }
 0x838   : > { %5461 = vmatmul.mubr.msk.f32.vlgmr.msra.gmra.mxu1 %vm1018_vm3, %v2025_v8  ;;  %5468 = vmatprep.subr.mxu1 %v5762_v13 }
 0x839   : > { %5469 = vmatpush3.xpose.msk.msra.mxu1 %vm1018_vm3, %v2264_v10  ;;  %5470 = vmatprep.mubr.msk.f32.mxu1 %vm5763_vm2, %v5762_v13 }
 0x83a   : > { %v2262_v11 = vpop.permute.xlu0 %2261  ;;  %5478 = vmatprep.subr.mxu1 %v5762_v13 }
 0x83c   : > { %5471 = vmatmul.mubr.msk.f32.vlgmr.msra.gmra.mxu1 %vm1018_vm3, %v2262_v11 }
 0x83d   : > { %5480 = vmatprep.mubr.msk.f32.mxu1 %vm5763_vm2, %v5762_v13 }
 0x840   : > { %v5701_v14 = vpop.eup %5700 }
 0x841   : > { %v2024_v15 = vmul.f32 %v5701_v14, %v5697_v2 }
 0x843   : > { %5456 = vmatmul.mubr.msk.f32.vlgmr.msra.gmra.mxu0 %vm1018_vm3, %v2024_v15 }
 0x844   : > { %5464 = vmatpush3.msra.mxu0 %v1007_v16 }
 0x845   : > { %5473 = vmatprep.subr.mxu0 %v5762_v13 }
 0x8f8   : > { %v2174_v19 = vpop.f32.mrf.mxu1 }
 0x8fa   : > { %v5462_v20 = vpop.f32.mrf.mxu1 }
 0x8fc   : > { %v2335_v21 = vpop.f32.mrf.mxu1 }
 0x8fd   : > { %v2417_v23 = vmul.f32 0.35355338, %v2335_v21 }
 0x8fe   : > { %v5472_v24 = vpop.f32.mrf.mxu1 }
 0x8ff   : > { %v2419_v25 = vadd.f32 %v2417_v23, %v6032_v26  ;;  %v2825_v24 = vld [vmem:[%s5931_s6 + $0x18] sm:$0xff] }
 0x901   : > { %v2421_v27 = vsel %vm1018_vm3, %v2419_v25, -inf }
 0x902   : > { %2422 = vmax.xlane.f32.xlu0 %v2421_v27  ;;  %v2733_v27 = vld [vmem:[%s5922_s3 + $0x18] sm:$0xff] }
 0x903   : > { %v2098_v29 = vpop.f32.mrf.mxu0 }
 0x904   : > { %5465 = vmatprep.mubr.msk.f32.mxu0 %vm1018_vm3, %v2098_v29  ;;  %v2823_v29 = vld [vmem:[%s5931_s6 + $0x8] sm:$0xff] }
 0x905   : > { %v5457_v30 = vpop.f32.mrf.mxu0  ;;  %5466 = vmatmul.mubr.msk.f32.vlgmr.msra.gmra.mxu0 %vm1018_vm3, %v2174_v19 }
 0x906   : > { %5474 = vmatpush3.xpose.msk.msra.mxu0 %vm1018_vm3, %v2342_v28  ;;  %5475 = vmatprep.mubr.msk.f32.mxu0 %vm5763_vm2, %v5762_v13  ;;  %v2732_v28 = vld [vmem:[%s5922_s3 + $0x10] sm:$0xff]  ;;  %v910_v30 = vld [vmem:[%s6524_s4] sm:$0xff] }
 0x907   : > { %5483 = vmatprep.subr.mxu0 %v5762_v13 }
 0x909   : > { %5476 = vmatmul.mubr.msk.f32.vlgmr.msra.gmra.mxu0 %vm1018_vm3, %v2340_v31  ;;  %v2822_v31 = vld [vmem:[%s5931_s6] sm:$0xff] }
 0x90a   : > { %5485 = vmatprep.mubr.msk.f32.mxu0 %vm5763_vm2, %v5762_v13 }
 0x98b   : > { %v2423_v32 = vpop.xlane.xlu0 %2422 }
 0x98c   : > { %v2427_v33 = vsub.f32 %v2419_v25, %v2423_v32  ;;  %v2824_v25 = vld [vmem:[%s5931_s6 + $0x10] sm:$0xff]  ;;  %v2731_v32 = vld [vmem:[%s5922_s3 + $0x8] sm:$0xff] }
 0x98e   : > { %v2429_v34 = vmul.f32 1.442695, %v2427_v33  ;;  %v911_v33 = vld [vmem:[%s6524_s4 + $0x8] sm:$0xff] }
 0x990   : > { %5702 = vpow2.f32 %v2429_v34  ;;  %v2730_v34 = vld [vmem:[%s5922_s3] sm:$0xff] }
 0x99d   : > { %v5703_v35 = vpop.eup %5702 }
 0x99e   : > { %v2433_v36 = vsel %vm1018_vm3, %v5703_v35, 0.0 }
 0x99f   : > { %2434 = vadd.xlane.f32.xlu0 %v2433_v36 }
 0x9c5   : > { %v5467_v38 = vpop.f32.mrf.mxu0 }
 0x9c6   : > { %v2260_v40 = vadd.f32 %v5467_v38, %v1841_v37 }
 0x9c7   : > { %v2250_v42 = vpop.f32.mrf.mxu0 }
 0x9c8   : > { %v2259_v44 = vadd.f32 %v2250_v42, %v1836_v39  ;;  %v2720_v42 = vsub.s32 0, %v6029_v22 }
 0x9c9   : > { %v2413_v45 = vpop.f32.mrf.mxu0 }
 0x9ca   : > { %v2418_v46 = vmul.f32 0.35355338, %v2413_v45 }
 0x9cb   : > { %v5477_v47 = vpop.f32.mrf.mxu0 }
 0x9cc   : > { %v2420_v48 = vadd.f32 %v2418_v46, %v6032_v26  ;;  %v2690_v47 = vld [vmem:[%s5974_s30] sm:$0x7] }
 0x9ce   : > { %v2424_v49 = vsel %vm1018_vm3, %v2420_v48, -inf }
 0x9cf   : > { %2425 = vmax.xlane.f32.xlu1 %v2424_v49 }
 0x9e0   : > { %2443 = vrot.lane.b32.xlu1 %v6009_v17, %s5775_s11  ;;  %v1008_v17 = vld [vmem:[%s5913_s1 + $0x18] sm:$0xff]  ;;  %s6525_s1 = scalar_lea.vmem %s6476_s12, %s5898_s26 }
 0xa28   : > { %v2435_v41 = vpop.xlane.xlu0 %2434 }
 0xa29   : > { %5704 = vrcp.f32 %v2435_v41 }
 0xa36   : > { %v5705_v51 = vpop.eup %5704 }
 0xa37   : > { %v2441_v54 = vmul.f32 %v5705_v51, %v5703_v35  ;;  %v2727_v51 = vrot.slane %v2690_v47, %v2720_v42 }
 0xa58   : > { %v2426_v50 = vpop.xlane.xlu1 %2425 }
 0xa59   : > { %v2428_v43 = vsub.f32 %v2420_v48, %v2426_v50 }
 0xa5b   : > { %v2431_v52 = vmul.f32 1.442695, %v2428_v43 }
 0xa5c   : > { %v2444_v53 = vpop.permute.xlu1 %2443 }
 0xa5d   : > { %5706 = vpow2.f32 %v2431_v52  ;;  %5479 = vmatpush3.msra.mxu1 %v2444_v53 }
 0xa5e   : > { %5481 = vmatmul.mubr.msk.f32.vlgmr.msra.gmra.mxu1 %vm1018_vm3, %v2441_v54  ;;  %5488 = vmatprep.subr.mxu1 %v1008_v17  ;;  %v5199_v54 = vld [vmem:[%s6525_s1] ss:$0 sm:$0xff] }
 0xa5f   : > { %5489 = vmatpush3.msra.mxu1 %v1008_v17 }
 0xa60   : > { %5504 = vmatprep.subr.mxu1 %v2825_v24 }
 0xa6a   : > { %v5707_v26 = vpop.eup %5706 }
 0xa6b   : > { %v2436_v55 = vsel %vm1018_vm3, %v5707_v26, 0.0 }
 0xa6c   : > { %2437 = vadd.xlane.f32.xlu0 %v2436_v55 }
 0xa82   : > { %2519 = vrot.lane.b32.xlu0 %v6013_v18, %s5775_s11 }
 0xaf5   : > { %v2438_v56 = vpop.xlane.xlu0 %2437 }
 0xaf6   : > { %5708 = vrcp.f32 %v2438_v56 }
 0xaf9   : > { %v2520_v57 = vpop.permute.xlu0 %2519 }
 0xafa   : > { %5484 = vmatpush3.msra.mxu0 %v2520_v57  ;;  %v5196_v57 = vld [vmem:[%s6526_s5] ss:$0 sm:$0xff] }
 0xafb   : > { %5493 = vmatprep.subr.mxu0 %v2733_v27 }
 0xb03   : > { %v5709_v58 = vpop.eup %5708 }
 0xb04   : > { %v2442_v59 = vmul.f32 %v5709_v58, %v5707_v26 }
 0xb06   : > { %5486 = vmatmul.mubr.msk.f32.vlgmr.msra.gmra.mxu0 %vm1018_vm3, %v2442_v59 }
 0xb07   : > { %5494 = vmatpush3.msra.mxu0 %v2733_v27 }
 0xb08   : > { %5495 = vmatprep.subr.mxu0 %v2732_v28 }
 0xb09   : > { %5496 = vmatpush3.msra.mxu0 %v2732_v28 }
 0xb0a   : > { %5497 = vmatprep.subr.mxu0 %v2731_v32 }
 0xb0b   : > { %5498 = vmatpush3.msra.mxu0 %v2731_v32 }
 0xb0c   : > { %5499 = vmatprep.subr.mxu0 %v2730_v34 }
 0xb0d   : > { %5500 = vmatpush3.msra.mxu0 %v2730_v34 }
 0xb0e   : > { %5515 = vmatprep.subr.mxu0 %v5762_v13 }
 0xb1e   : > { %v2515_v60 = vpop.f32.mrf.mxu1 }
 0xb1f   : > { %5490 = vmatprep.mubr.msk.f32.mxu1 %vm1018_vm3, %v2515_v60 }
 0xb20   : > { %v5482_v61 = vpop.f32.mrf.mxu1 }
 0xbc6   : > { %v2591_v62 = vpop.f32.mrf.mxu0 }
 0xbc7   : > { %5491 = vmatmul.mubr.msk.f32.vlgmr.msra.gmra.mxu1 %vm1018_vm3, %v2591_v62 }
 0xbc8   : > { %v5487_v18 = vpop.f32.mrf.mxu0  ;;  %5505 = vmatpush3.msra.mxu1 %v2825_v24  ;;  %5512 = vmatprep.mubr.msk.f32.mxu1 %vm923_vm1, %v910_v30 }
 0xbc9   : > { %5506 = vmatprep.subr.mxu1 %v2824_v25 }
 0xbca   : > { %5507 = vmatpush3.msra.mxu1 %v2824_v25 }
 0xbcb   : > { %5508 = vmatprep.subr.mxu1 %v2823_v29 }
 0xbcc   : > { %5509 = vmatpush3.msra.mxu1 %v2823_v29 }
 0xbcd   : > { %5510 = vmatprep.subr.mxu1 %v2822_v31 }
 0xbce   : > { %5511 = vmatpush3.msra.mxu1 %v2822_v31 }
 0xbcf   : > { %5513 = vmatmul.mubr.msk.f32.vlgmr.msra.gmra.mxu1 %vm923_vm1, %v911_v33  ;;  %5520 = vmatprep.subr.mxu1 %v5762_v13 }
 0xbd0   : > { %5522 = vmatprep.mubr.msk.f32.mxu1 %vm5763_vm2, %v5762_v13 }
 0xc87   : > { %v5492_v63 = vpop.f32.mrf.mxu1 }
 0xc88   : > { %v2677_v1 = vadd.f32 %v5492_v63, %v2260_v40 }
 0xc89   : > { %v2667_v2 = vpop.f32.mrf.mxu1 }
 0xc8a   : > { %v2686_v3 = vadd.f32 %v5195_v0, %v2677_v1  ;;  %v2676_v4 = vadd.f32 %v2667_v2, %v2259_v44  ;;  %v2689_v44 = vld [vmem:[%s5969_s27] sm:$0x7] }
 0xc8b   : > { %v2721_v46 = vrot.slane %v2689_v44, %v2720_v42 }
 0xc8c   : > { %v2685_v5 = vadd.f32 %v5195_v0, %v2676_v4  ;;  %v2688_v6 = vadd.f32 %v2686_v3, %v5994_v12 }
 0xc8e   : > { %v2694_v7 = vsel %vm923_vm1, %v2688_v6, 0.0  ;;  %v2687_v8 = vadd.f32 %v2685_v5, %v5988_v9 }
 0xc8f   : > { %2695 = vadd.xlane.f32.xlu0 %v2694_v7  ;;  %v5514_v26 = vpop.f32.mrf.mxu1 }
 0xc90   : > { %v2691_v10 = vsel %vm923_vm1, %v2687_v8, 0.0  ;;  %v6221_v55 = vadd.f32 %v5514_v26, %v5199_v54 }
 0xc91   : > { %2692 = vadd.xlane.f32.xlu1 %v2691_v10  ;;  %v2905_v17 = vpop.f32.mrf.mxu1 }
 0xc92   : > { %v6223_v56 = vadd.f32 %v5199_v54, %v2905_v17  ;;  %5521 = vmatpush3.xpose.msk.msra.mxu1 %vm1018_vm3, %v6221_v55 }
 0xc93   : > { %5530 = vmatprep.subr.mxu1 %v5762_v13 }
 0xd18   : > { %v2696_v11 = vpop.xlane.xlu0 %2695 }
 0xd19   : > { %v2699_v14 = vmul.f32 0.03125, %v2696_v11 }
 0xd1a   : > { %v2693_v15 = vpop.xlane.xlu1 %2692 }
 0xd1b   : > { %v2701_v16 = vsub.f32 %v2688_v6, %v2699_v14  ;;  %v2698_v19 = vmul.f32 0.03125, %v2693_v15 }
 0xd1d   : > { %v2700_v20 = vsub.f32 %v2687_v8, %v2698_v19  ;;  %v2703_v12 = vmul.f32 %v2701_v16, %v2701_v16 }
 0xd1f   : > { %v2707_v21 = vsel %vm923_vm1, %v2703_v12, 0.0  ;;  %v2702_v23 = vmul.f32 %v2700_v20, %v2700_v20 }
 0xd20   : > { %2708 = vadd.xlane.f32.xlu0 %v2707_v21 }
 0xd21   : > { %v2704_v9 = vsel %vm923_vm1, %v2702_v23, 0.0 }
 0xd22   : > { %2705 = vadd.xlane.f32.xlu1 %v2704_v9 }
 0xda9   : > { %v2709_v35 = vpop.xlane.xlu0 %2708 }
 0xdaa   : > { %v2711_v36 = vmul.f32 0.03125, %v2709_v35 }
 0xdab   : > { %v2706_v37 = vpop.xlane.xlu1 %2705 }
 0xdac   : > { %v2713_v38 = vadd.f32 1e-05, %v2711_v36  ;;  %v2710_v39 = vmul.f32 0.03125, %v2706_v37 }
 0xdae   : > { %5710 = vrsqrt.f32 %v2713_v38  ;;  %v2712_v40 = vadd.f32 1e-05, %v2710_v39 }
 0xdb0   : > { %5712 = vrsqrt.f32 %v2712_v40 }
 0xdbb   : > { %v5711_v45 = vpop.eup %5710 }
 0xdbc   : > { %v2717_v48 = vmul.f32 %v5711_v45, %v2701_v16 }
 0xdbd   : > { %v5713_v49 = vpop.eup %5712 }
 0xdbe   : > { %v2716_v41 = vmul.f32 %v5713_v49, %v2700_v20  ;;  %v2723_v50 = vmul.f32 %v2721_v46, %v2717_v48 }
 0xdc0   : > { %v2722_v43 = vmul.f32 %v2721_v46, %v2716_v41  ;;  %v6208_v53 = vadd.f32 %v2727_v51, %v2723_v50 }
 0xdc2   : > { %v6206_v52 = vadd.f32 %v2727_v51, %v2722_v43 }
 0xdc4   : > { %5501 = vmatprep.mubr.msk.f32.mxu0 %vm923_vm1, %v6206_v52 }
 0xdc5   : > { %5502 = vmatmul.mubr.msk.f32.vlgmr.msra.gmra.mxu0 %vm923_vm1, %v6208_v53 }
 0xdc6   : > { %5517 = vmatprep.mubr.msk.f32.mxu0 %vm5763_vm2, %v5762_v13  ;;  %5516 = vmatpush3.xpose.msk.msra.mxu0 %vm1018_vm3, %v6223_v56 }
 0xdc7   : > { %5525 = vmatprep.subr.mxu0 %v5762_v13 }
 0xe85   : > { %v5503_v58 = vpop.f32.mrf.mxu0 }
 0xe86   : > { %v6236_v59 = vadd.f32 %v5503_v58, %v5196_v57 }
 0xe87   : > { %v2813_v60 = vpop.f32.mrf.mxu0 }
 0xe88   : > { %v6238_v61 = vadd.f32 %v5196_v57, %v2813_v60  ;;  %5523 = vmatmul.mubr.msk.f32.vlgmr.msra.gmra.mxu1 %vm1018_vm3, %v6236_v59  ;;  %v2914_v60 = vld [vmem:[%s5940_s21] sm:$0xff] }
 0xe89   : > { %5532 = vmatprep.mubr.msk.f32.mxu1 %vm5763_vm2, %v5762_v13 }
 0xe8a   : > { %5518 = vmatmul.mubr.msk.f32.vlgmr.msra.gmra.mxu0 %vm1018_vm3, %v6238_v61 }
 0xe8b   : > { %5527 = vmatprep.mubr.msk.f32.mxu0 %vm5763_vm2, %v5762_v13 }
 0xf48   : > { %v3066_v62 = vpop.f32.mrf.mxu1 }
 0xf49   : > { %v3071_v18 = vmul.f32 0.35355338, %v3066_v62 }
 0xf4a   : > { %v2990_v63 = vpop.f32.mrf.mxu0  ;;  %v5524_v0 = vpop.f32.mrf.mxu1 }
 0xf4b   : > { %v3070_v1 = vmul.f32 0.35355338, %v2990_v63  ;;  %v3075_v2 = vsel %vm1018_vm3, %v3071_v18, -inf }
 0xf4c   : > { %3076 = vmax.xlane.f32.xlu0 %v3075_v2  ;;  %v5519_v3 = vpop.f32.mrf.mxu0 }
 0xf4d   : > { %v3072_v4 = vsel %vm1018_vm3, %v3070_v1, -inf }
 0xf4e   : > { %3073 = vmax.xlane.f32.xlu1 %v3072_v4 }
 0xf5f   : > { %3094 = vrot.lane.b32.xlu1 %v6223_v56, %s5764_s20 }
 0xf62   : > { %3170 = vrot.lane.b32.xlu0 %v6221_v55, %s5764_s20 }
 0xf63   : > { %3248 = vrot.lane.b32.xlu1 %v6223_v56, %s5767_s29 }
 0xf67   : > { %3326 = vrot.lane.b32.xlu1 %v6221_v55, %s5767_s29 }
 0xfd5   : > { %v3077_v5 = vpop.xlane.xlu0 %3076 }
 0xfd6   : > { %v3079_v6 = vsub.f32 %v3071_v18, %v3077_v5  ;;  %v2915_v5 = vld [vmem:[%s5940_s21 + $0x8] sm:$0xff] }
 0xfd7   : > { %v3074_v7 = vpop.xlane.xlu1 %3073 }
 0xfd8   : > { %v3082_v8 = vmul.f32 1.442695, %v3079_v6  ;;  %v3078_v10 = vsub.f32 %v3070_v1, %v3074_v7 }
 0xfd9   : > { %v3171_v11 = vpop.permute.xlu0 %3170 }
 0xfda   : > { %5714 = vpow2.f32 %v3082_v8  ;;  %v3080_v14 = vmul.f32 1.442695, %v3078_v10  ;;  %5531 = vmatpush3.msra.mxu1 %v3171_v11 }
 0xfdb   : > { %v3095_v15 = vpop.permute.xlu1 %3094  ;;  %5540 = vmatprep.subr.mxu1 %v5762_v13 }
 0xfdc   : > { %5716 = vpow2.f32 %v3080_v14  ;;  %5526 = vmatpush3.msra.mxu0 %v3095_v15 }
 0xfdd   : > { %5535 = vmatprep.subr.mxu0 %v5762_v13 }
 0xfdf   : > { %v3249_v21 = vpop.permute.xlu1 %3248 }
 0xfe3   : > { %v3327_v23 = vpop.permute.xlu1 %3326 }
 0xfe7   : > { %v5715_v16 = vpop.eup %5714 }
 0xfe8   : > { %v3087_v19 = vsel %vm1018_vm3, %v5715_v16, 0.0 }
 0xfe9   : > { %v5717_v20 = vpop.eup %5716  ;;  %3088 = vadd.xlane.f32.xlu0 %v3087_v19 }
 0xfea   : > { %v3084_v12 = vsel %vm1018_vm3, %v5717_v20, 0.0 }
 0xfeb   : > { %3085 = vadd.xlane.f32.xlu1 %v3084_v12 }
 0xffc   : > { %3324 = vrot.lane.b32.xlu1 %v6236_v59, %s5767_s29 }
 0xfff   : > { %3246 = vrot.lane.b32.xlu0 %v6238_v61, %s5767_s29  ;;  %s6527_s29 = sld [smem:[#allocation16_spill]] }
0x1072   : > { %v3089_v9 = vpop.xlane.xlu0 %3088 }
0x1073   : > { %5718 = vrcp.f32 %v3089_v9 }
0x1074   : > { %v3086_v24 = vpop.xlane.xlu1 %3085 }
0x1075   : > { %5720 = vrcp.f32 %v3086_v24 }
0x1076   : > { %v3247_v31 = vpop.permute.xlu0 %3246 }
0x1078   : > { %v3325_v30 = vpop.permute.xlu1 %3324 }
0x1080   : > { %v5719_v25 = vpop.eup %5718 }
0x1081   : > { %v3093_v27 = vmul.f32 %v5719_v25, %v5715_v16 }
0x1082   : > { %v5721_v28 = vpop.eup %5720 }
0x1083   : > { %5533 = vmatmul.mubr.msk.f32.vlgmr.msra.gmra.mxu1 %vm1018_vm3, %v3093_v27  ;;  %v3092_v29 = vmul.f32 %v5721_v28, %v5717_v20 }
0x1084   : > { %5541 = vmatpush3.xpose.msk.msra.mxu1 %vm1018_vm3, %v3327_v23  ;;  %5542 = vmatprep.mubr.msk.f32.mxu1 %vm5763_vm2, %v5762_v13 }
0x1085   : > { %5528 = vmatmul.mubr.msk.f32.vlgmr.msra.gmra.mxu0 %vm1018_vm3, %v3092_v29  ;;  %5550 = vmatprep.subr.mxu1 %v5762_v13 }
0x1086   : > { %5536 = vmatpush3.xpose.msk.msra.mxu0 %vm1018_vm3, %v3249_v21  ;;  %5537 = vmatprep.mubr.msk.f32.mxu0 %vm5763_vm2, %v5762_v13 }
0x1087   : > { %5543 = vmatmul.mubr.msk.f32.vlgmr.msra.gmra.mxu1 %vm1018_vm3, %v3325_v30  ;;  %5545 = vmatprep.subr.mxu0 %v5762_v13 }
0x1088   : > { %5552 = vmatprep.mubr.msk.f32.mxu1 %vm5763_vm2, %v5762_v13 }
0x1089   : > { %5538 = vmatmul.mubr.msk.f32.vlgmr.msra.gmra.mxu0 %vm1018_vm3, %v3247_v31 }
0x108a   : > { %5547 = vmatprep.mubr.msk.f32.mxu0 %vm5763_vm2, %v5762_v13 }
0x1143   : > { %v3242_v32 = vpop.f32.mrf.mxu1 }
0x1145   : > { %v3166_v33 = vpop.f32.mrf.mxu0  ;;  %v5534_v34 = vpop.f32.mrf.mxu1 }
0x1147   : > { %v5529_v35 = vpop.f32.mrf.mxu0  ;;  %v3398_v36 = vpop.f32.mrf.mxu1 }
0x1148   : > { %v3403_v37 = vmul.f32 0.35355338, %v3398_v36 }
0x1149   : > { %v3320_v38 = vpop.f32.mrf.mxu0  ;;  %v5544_v39 = vpop.f32.mrf.mxu1 }
0x114a   : > { %v3402_v40 = vmul.f32 0.35355338, %v3320_v38  ;;  %v3407_v42 = vsel %vm1018_vm3, %v3403_v37, -inf }
0x114b   : > { %3408 = vmax.xlane.f32.xlu1 %v3407_v42  ;;  %v5539_v44 = vpop.f32.mrf.mxu0 }
0x114c   : > { %v3404_v45 = vsel %vm1018_vm3, %v3402_v40, -inf }
0x114d   : > { %3405 = vmax.xlane.f32.xlu0 %v3404_v45 }
0x115c   : > { %3426 = vrot.lane.b32.xlu1 %v6223_v56, %s5768_s28 }
0x1160   : > { %3742 = vrot.lane.b32.xlu1 %v6223_v56, %s5770_s7 }
0x1164   : > { %3820 = vrot.lane.b32.xlu1 %v6221_v55, %s5770_s7 }
0x1168   : > { %3818 = vrot.lane.b32.xlu1 %v6236_v59, %s5770_s7 }
0x11d4   : > { %v3409_v46 = vpop.xlane.xlu1 %3408 }
0x11d5   : > { %v3411_v47 = vsub.f32 %v3403_v37, %v3409_v46 }
0x11d6   : > { %v3406_v48 = vpop.xlane.xlu0 %3405 }
0x11d7   : > { %v3414_v49 = vmul.f32 1.442695, %v3411_v47  ;;  %v3410_v41 = vsub.f32 %v3402_v40, %v3406_v48  ;;  %v2916_v48 = vld [vmem:[%s5940_s21 + $0x10] sm:$0xff] }
0x11d8   : > { %v3427_v50 = vpop.permute.xlu1 %3426 }
0x11d9   : > { %5722 = vpow2.f32 %v3414_v49  ;;  %v3412_v51 = vmul.f32 1.442695, %v3410_v41  ;;  %5546 = vmatpush3.msra.mxu0 %v3427_v50 }
0x11da   : > { %5555 = vmatprep.subr.mxu0 %v2915_v5 }
0x11db   : > { %5724 = vpow2.f32 %v3412_v51 }
0x11dc   : > { %v3743_v18 = vpop.permute.xlu1 %3742 }
0x11e0   : > { %v3821_v2 = vpop.permute.xlu1 %3820 }
0x11e4   : > { %v3819_v4 = vpop.permute.xlu1 %3818 }
0x11e6   : > { %v5723_v43 = vpop.eup %5722 }
0x11e7   : > { %v3419_v54 = vsel %vm1018_vm3, %v5723_v43, 0.0 }
0x11e8   : > { %v5725_v26 = vpop.eup %5724  ;;  %3420 = vadd.xlane.f32.xlu0 %v3419_v54 }
0x11e9   : > { %v3416_v17 = vsel %vm1018_vm3, %v5725_v26, 0.0 }
0x11ec   : > { %3417 = vadd.xlane.f32.xlu0 %v3416_v17 }
0x1202   : > { %3502 = vrot.lane.b32.xlu0 %v6221_v55, %s5768_s28  ;;  %s6528_s28 = scalar_lea.vmem %s6527_s29, %s5898_s26 }
0x1206   : > { %3740 = vrot.lane.b32.xlu0 %v6238_v61, %s5770_s7 }
0x1271   : > { %v3421_v57 = vpop.xlane.xlu0 %3420 }
0x1272   : > { %5726 = vrcp.f32 %v3421_v57 }
0x1275   : > { %v3418_v58 = vpop.xlane.xlu0 %3417 }
0x1276   : > { %5728 = vrcp.f32 %v3418_v58 }
0x1279   : > { %v3503_v62 = vpop.permute.xlu0 %3502 }
0x127a   : > { %5551 = vmatpush3.msra.mxu1 %v3503_v62 }
0x127b   : > { %5560 = vmatprep.subr.mxu1 %v2914_v60 }
0x127d   : > { %v3741_v16 = vpop.permute.xlu0 %3740 }
0x127f   : > { %v5727_v63 = vpop.eup %5726 }
0x1280   : > { %v3425_v0 = vmul.f32 %v5727_v63, %v5723_v43 }
0x1282   : > { %5553 = vmatmul.mubr.msk.f32.vlgmr.msra.gmra.mxu1 %vm1018_vm3, %v3425_v0 }
0x1283   : > { %v5729_v1 = vpop.eup %5728  ;;  %5562 = vmatprep.mubr.msk.f32.mxu1 %vm1018_vm3, %v3166_v33  ;;  %5561 = vmatpush3.msra.mxu1 %v2914_v60 }
0x1284   : > { %5570 = vmatprep.subr.mxu1 %v5762_v13  ;;  %v3424_v3 = vmul.f32 %v5729_v1, %v5725_v26 }
0x1286   : > { %5548 = vmatmul.mubr.msk.f32.vlgmr.msra.gmra.mxu0 %vm1018_vm3, %v3424_v3  ;;  %5563 = vmatmul.mubr.msk.f32.vlgmr.msra.gmra.mxu1 %vm1018_vm3, %v3242_v32 }
0x1287   : > { %5571 = vmatpush3.xpose.msk.msra.mxu1 %vm1018_vm3, %v3821_v2  ;;  %5572 = vmatprep.mubr.msk.f32.mxu1 %vm5763_vm2, %v5762_v13 }
0x1288   : > { %5580 = vmatprep.subr.mxu1 %v5762_v13  ;;  %5556 = vmatpush3.msra.mxu0 %v2915_v5 }
0x1289   : > { %5565 = vmatprep.subr.mxu0 %v5762_v13 }
0x128a   : > { %5573 = vmatmul.mubr.msk.f32.vlgmr.msra.gmra.mxu1 %vm1018_vm3, %v3819_v4 }
0x128b   : > { %5582 = vmatprep.mubr.msk.f32.mxu1 %vm5763_vm2, %v5762_v13 }
0x1342   : > { %v3574_v6 = vpop.f32.mrf.mxu1 }
0x1344   : > { %v5554_v7 = vpop.f32.mrf.mxu1 }
0x1346   : > { %v3498_v8 = vpop.f32.mrf.mxu0  ;;  %v6313_v10 = vpop.f32.mrf.mxu1 }
0x1347   : > { %5557 = vmatprep.mubr.msk.f32.mxu0 %vm1018_vm3, %v3498_v8 }
0x1348   : > { %v5549_v11 = vpop.f32.mrf.mxu0  ;;  %5558 = vmatmul.mubr.msk.f32.vlgmr.msra.gmra.mxu0 %vm1018_vm3, %v3574_v6  ;;  %v6317_v14 = vpop.f32.mrf.mxu1 }
0x1349   : > { %5566 = vmatpush3.xpose.msk.msra.mxu0 %vm1018_vm3, %v3743_v18  ;;  %5567 = vmatprep.mubr.msk.f32.mxu0 %vm5763_vm2, %v5762_v13 }
0x134a   : > { %v3892_v15 = vpop.f32.mrf.mxu1  ;;  %5575 = vmatprep.subr.mxu0 %v5762_v13 }
0x134b   : > { %v3897_v19 = vmul.f32 0.35355338, %v3892_v15 }
0x134c   : > { %5568 = vmatmul.mubr.msk.f32.vlgmr.msra.gmra.mxu0 %vm1018_vm3, %v3741_v16  ;;  %v5574_v20 = vpop.f32.mrf.mxu1 }
0x134d   : > { %v3901_v12 = vsel %vm1018_vm3, %v3897_v19, -inf  ;;  %5577 = vmatprep.mubr.msk.f32.mxu0 %vm5763_vm2, %v5762_v13 }
0x134e   : > { %3902 = vmax.xlane.f32.xlu1 %v3901_v12 }
0x135f   : > { %3920 = vrot.lane.b32.xlu1 %v6223_v56, %s5771_s22 }
0x1363   : > { %4157 = vrot.lane.b32.xlu1 %v6223_v56, %s5774_s9 }
0x1367   : > { %4235 = vrot.lane.b32.xlu1 %v6221_v55, %s5774_s9 }
0x136b   : > { %4233 = vrot.lane.b32.xlu1 %v6236_v59, %s5774_s9 }
0x13d7   : > { %v3903_v21 = vpop.xlane.xlu1 %3902 }
0x13d8   : > { %v3905_v9 = vsub.f32 %v3897_v19, %v3903_v21 }
0x13da   : > { %v3908_v24 = vmul.f32 1.442695, %v3905_v9 }
0x13db   : > { %v3921_v23 = vpop.permute.xlu1 %3920 }
0x13dc   : > { %5576 = vmatpush3.msra.mxu0 %v3921_v23  ;;  %5730 = vpow2.f32 %v3908_v24 }
0x13dd   : > { %5585 = vmatprep.subr.mxu0 %v2916_v48 }
0x13df   : > { %v4158_v45 = vpop.permute.xlu1 %4157 }
0x13e3   : > { %v4236_v26 = vpop.permute.xlu1 %4235 }
0x13e7   : > { %v4234_v58 = vpop.permute.xlu1 %4233 }
0x13e9   : > { %v5731_v32 = vpop.eup %5730 }
0x13ea   : > { %v3913_v33 = vsel %vm1018_vm3, %v5731_v32, 0.0 }
0x1408   : > { %v6335_v25 = vpop.f32.mrf.mxu0 }
0x1409   : > { %v3737_v1 = vadd.f32 %v6313_v10, %v6335_v25 }
0x140a   : > { %v6337_v27 = vpop.f32.mrf.mxu0 }
0x140b   : > { %v3732_v3 = vadd.f32 %v6317_v14, %v6337_v27 }
0x140c   : > { %v3814_v28 = vpop.f32.mrf.mxu0 }
0x140d   : > { %v3896_v29 = vmul.f32 0.35355338, %v3814_v28 }
0x140e   : > { %v5569_v30 = vpop.f32.mrf.mxu0 }
0x140f   : > { %v3898_v31 = vsel %vm1018_vm3, %v3896_v29, -inf }
0x1410   : > { %3899 = vmax.xlane.f32.xlu0 %v3898_v31 }
0x1414   : > { %3914 = vadd.xlane.f32.xlu0 %v3913_v33 }
0x1499   : > { %v3900_v59 = vpop.xlane.xlu0 %3899 }
0x149a   : > { %v3904_v34 = vsub.f32 %v3896_v29, %v3900_v59 }
0x149c   : > { %v3906_v35 = vmul.f32 1.442695, %v3904_v34 }
0x149d   : > { %v3915_v38 = vpop.xlane.xlu0 %3914 }
0x149e   : > { %5732 = vpow2.f32 %v3906_v35 }
0x149f   : > { %5734 = vrcp.f32 %v3915_v38 }
0x14ab   : > { %v5733_v36 = vpop.eup %5732 }
0x14ac   : > { %v3910_v37 = vsel %vm1018_vm3, %v5733_v36, 0.0  ;;  %v5735_v40 = vpop.eup %5734 }
0x14ad   : > { %3911 = vadd.xlane.f32.xlu0 %v3910_v37  ;;  %v3919_v44 = vmul.f32 %v5735_v40, %v5731_v32  ;;  %v5234_v32 = vld [vmem:[%s6528_s28] ss:$0 sm:$0xff] }
0x14c3   : > { %3996 = vrot.lane.b32.xlu0 %v6221_v55, %s5771_s22 }
0x14c7   : > { %4155 = vrot.lane.b32.xlu0 %v6238_v61, %s5774_s9 }
0x1536   : > { %v3912_v39 = vpop.xlane.xlu0 %3911 }
0x1537   : > { %5736 = vrcp.f32 %v3912_v39 }
0x153a   : > { %v3997_v42 = vpop.permute.xlu0 %3996 }
0x153b   : > { %5581 = vmatpush3.msra.mxu1 %v3997_v42 }
0x153c   : > { %5583 = vmatmul.mubr.msk.f32.vlgmr.msra.gmra.mxu1 %vm1018_vm3, %v3919_v44  ;;  %5590 = vmatprep.subr.mxu1 %v5762_v13 }
0x153d   : > { %5591 = vmatpush3.xpose.msk.msra.mxu1 %vm1018_vm3, %v4158_v45  ;;  %5592 = vmatprep.mubr.msk.f32.mxu1 %vm5763_vm2, %v5762_v13 }
0x153e   : > { %v4156_v61 = vpop.permute.xlu0 %4155  ;;  %5600 = vmatprep.subr.mxu1 %v5762_v13 }
0x1540   : > { %5593 = vmatmul.mubr.msk.f32.vlgmr.msra.gmra.mxu1 %vm1018_vm3, %v4156_v61 }
0x1541   : > { %5602 = vmatprep.mubr.msk.f32.mxu1 %vm5763_vm2, %v5762_v13 }
0x1544   : > { %v5737_v46 = vpop.eup %5736 }
0x1545   : > { %v3918_v47 = vmul.f32 %v5737_v46, %v5733_v36 }
0x1547   : > { %5578 = vmatmul.mubr.msk.f32.vlgmr.msra.gmra.mxu0 %vm1018_vm3, %v3918_v47 }
0x1548   : > { %5586 = vmatpush3.msra.mxu0 %v2916_v48 }
0x1549   : > { %5595 = vmatprep.subr.mxu0 %v5762_v13 }
0x15fc   : > { %v4068_v49 = vpop.f32.mrf.mxu1 }
0x15fe   : > { %v5584_v41 = vpop.f32.mrf.mxu1 }
0x15ff   : > { %v4624_v41 = vld [vmem:[%s5949_s0 + $0x18] sm:$0xff] }
0x1600   : > { %v4229_v50 = vpop.f32.mrf.mxu1 }
0x1601   : > { %v4311_v51 = vmul.f32 0.35355338, %v4229_v50  ;;  %v4623_v50 = vld [vmem:[%s5949_s0 + $0x10] sm:$0xff] }
0x1602   : > { %v5594_v43 = vpop.f32.mrf.mxu1 }
0x1603   : > { %v4313_v54 = vsel %vm1018_vm3, %v4311_v51, -inf  ;;  %v4621_v43 = vld [vmem:[%s5949_s0] sm:$0xff] }
0x1604   : > { %4314 = vmax.xlane.f32.xlu0 %v4313_v54  ;;  %v4722_v54 = vld [vmem:[%s5959_s2 + $0x38] sm:$0xff] }
0x1607   : > { %v3992_v17 = vpop.f32.mrf.mxu0 }
0x1608   : > { %5587 = vmatprep.mubr.msk.f32.mxu0 %vm1018_vm3, %v3992_v17  ;;  %v4720_v17 = vld [vmem:[%s5959_s2 + $0x28] sm:$0xff] }
0x1609   : > { %v5579_v57 = vpop.f32.mrf.mxu0  ;;  %5588 = vmatmul.mubr.msk.f32.vlgmr.msra.gmra.mxu0 %vm1018_vm3, %v4068_v49 }
0x160a   : > { %5596 = vmatpush3.xpose.msk.msra.mxu0 %vm1018_vm3, %v4236_v26  ;;  %5597 = vmatprep.mubr.msk.f32.mxu0 %vm5763_vm2, %v5762_v13  ;;  %v4721_v26 = vld [vmem:[%s5959_s2 + $0x30] sm:$0xff]  ;;  %v4719_v57 = vld [vmem:[%s5959_s2 + $0x20] sm:$0xff] }
0x160b   : > { %5605 = vmatprep.subr.mxu0 %v5762_v13 }
0x160d   : > { %5598 = vmatmul.mubr.msk.f32.vlgmr.msra.gmra.mxu0 %vm1018_vm3, %v4234_v58 }
0x160e   : > { %5607 = vmatprep.mubr.msk.f32.mxu0 %vm5763_vm2, %v5762_v13 }
0x168d   : > { %v4315_v60 = vpop.xlane.xlu0 %4314 }
0x168e   : > { %v4319_v62 = vsub.f32 %v4311_v51, %v4315_v60  ;;  %v4622_v51 = vld [vmem:[%s5949_s0 + $0x8] sm:$0xff] }
0x1690   : > { %v4321_v18 = vmul.f32 1.442695, %v4319_v62 }
0x1692   : > { %5738 = vpow2.f32 %v4321_v18 }
0x169f   : > { %v5739_v63 = vpop.eup %5738 }
0x16a0   : > { %v4325_v0 = vsel %vm1018_vm3, %v5739_v63, 0.0 }
0x16a1   : > { %4326 = vadd.xlane.f32.xlu0 %v4325_v0 }
0x16c9   : > { %v5589_v2 = vpop.f32.mrf.mxu0 }
0x16ca   : > { %v4154_v4 = vadd.f32 %v5589_v2, %v3737_v1  ;;  %v4611_v1 = vsub.s32 1, %v6029_v22  ;;  %v6405_v2 = vld [vmem:[%s5969_s27] sm:$0x7] }
0x16cb   : > { %v4144_v5 = vpop.f32.mrf.mxu0 }
0x16cc   : > { %v4153_v6 = vadd.f32 %v4144_v5, %v3732_v3  ;;  %v6409_v5 = vld [vmem:[%s5974_s30] sm:$0x7]  ;;  %s6529_s30 = scalar_lea.vmem %s6480_s16, %s5898_s26 }
0x16cd   : > { %v4307_v7 = vpop.f32.mrf.mxu0 }
0x16ce   : > { %v4312_v13 = vmul.f32 0.35355338, %v4307_v7 }
0x16cf   : > { %v5599_v8 = vpop.f32.mrf.mxu0 }
0x16d0   : > { %v4316_v11 = vsel %vm1018_vm3, %v4312_v13, -inf }
0x16d1   : > { %4317 = vmax.xlane.f32.xlu1 %v4316_v11  ;;  %v4618_v11 = vrot.slane %v6409_v5, %v4611_v1 }
0x16e2   : > { %4335 = vrot.lane.b32.xlu1 %v6223_v56, %s5773_s24  ;;  %v2917_v56 = vld [vmem:[%s5940_s21 + $0x18] sm:$0xff] }
0x172a   : > { %v4327_v15 = vpop.xlane.xlu0 %4326 }
0x172b   : > { %5740 = vrcp.f32 %v4327_v15 }
0x1738   : > { %v5741_v16 = vpop.eup %5740 }
0x1739   : > { %v4333_v12 = vmul.f32 %v5741_v16, %v5739_v63 }
0x175a   : > { %v4318_v10 = vpop.xlane.xlu1 %4317 }
0x175b   : > { %v4320_v19 = vsub.f32 %v4312_v13, %v4318_v10 }
0x175d   : > { %v4323_v20 = vmul.f32 1.442695, %v4320_v19  ;;  %v4718_v19 = vld [vmem:[%s5959_s2 + $0x18] sm:$0xff] }
0x175e   : > { %v4336_v14 = vpop.permute.xlu1 %4335 }
0x175f   : > { %5742 = vpow2.f32 %v4323_v20  ;;  %5601 = vmatpush3.msra.mxu1 %v4336_v14  ;;  %v4717_v20 = vld [vmem:[%s5959_s2 + $0x10] sm:$0xff]  ;;  %v4716_v14 = vld [vmem:[%s5959_s2 + $0x8] sm:$0xff] }
0x1760   : > { %5603 = vmatmul.mubr.msk.f32.vlgmr.msra.gmra.mxu1 %vm1018_vm3, %v4333_v12  ;;  %5610 = vmatprep.subr.mxu1 %v2917_v56  ;;  %v4715_v12 = vld [vmem:[%s5959_s2] sm:$0xff]  ;;  %s6530_s2 = scalar_lea.vmem %s6482_s18, %s5898_s26  ;;  %s6531_s26 = sld [smem:[#allocation4_spill]] }
0x1761   : > { %5611 = vmatpush3.msra.mxu1 %v2917_v56 }
0x1762   : > { %5626 = vmatprep.subr.mxu1 %v4722_v54 }
0x1766   : > { %p5241_p5 = scmp.ne.s32.totalorder %s6531_s26, 1 }
0x1767   : > { %s6532_s25 = sld [smem:[#allocation8_spill]] (!%p5241_p5) }
0x1768   : > { %s6533_s21 = sld [smem:[#allocation9_spill]] (!%p5241_p5) }
0x1769   : > { %s6534_s28 = sld [smem:[#allocation19_spill]] (!%p5241_p5) }
0x176c   : > { %v5743_v21 = vpop.eup %5742 }
0x176d   : > { %v4328_v23 = vsel %vm1018_vm3, %v5743_v21, 0.0 }
0x176e   : > { %4329 = vadd.xlane.f32.xlu0 %v4328_v23 }
0x1784   : > { %4411 = vrot.lane.b32.xlu0 %v6221_v55, %s5773_s24 }
0x17f7   : > { %v4330_v9 = vpop.xlane.xlu0 %4329 }
0x17f8   : > { %5744 = vrcp.f32 %v4330_v9 }
0x17fb   : > { %v4412_v24 = vpop.permute.xlu0 %4411 }
0x17fc   : > { %5606 = vmatpush3.msra.mxu0 %v4412_v24 }
0x17fd   : > { %5615 = vmatprep.subr.mxu0 %v4624_v41 }
0x1805   : > { %v5745_v25 = vpop.eup %5744 }
0x1806   : > { %v4334_v27 = vmul.f32 %v5745_v25, %v5743_v21  ;;  %v5235_v21 = vld [vmem:[%s6529_s30] ss:$0 sm:$0xff] }
0x1808   : > { %5608 = vmatmul.mubr.msk.f32.vlgmr.msra.gmra.mxu0 %vm1018_vm3, %v4334_v27 }
0x1809   : > { %5616 = vmatpush3.msra.mxu0 %v4624_v41  ;;  %v4842_v41 = vsub.s32 2, %v6029_v22 }
0x180a   : > { %5617 = vmatprep.subr.mxu0 %v4623_v50 }
0x180b   : > { %5618 = vmatpush3.msra.mxu0 %v4623_v50  ;;  %v4843_v50 = vrot.slane %v6405_v2, %v4842_v41 }
0x180c   : > { %5619 = vmatprep.subr.mxu0 %v4622_v51 }
0x180d   : > { %5620 = vmatpush3.msra.mxu0 %v4622_v51 }
0x180e   : > { %5621 = vmatprep.subr.mxu0 %v4621_v43 }
0x180f   : > { %5622 = vmatpush3.msra.mxu0 %v4621_v43  ;;  %v4849_v43 = vrot.slane %v6409_v5, %v4842_v41 }
0x1820   : > { %v4407_v28 = vpop.f32.mrf.mxu1 }
0x1821   : > { %5612 = vmatprep.mubr.msk.f32.mxu1 %vm1018_vm3, %v4407_v28  ;;  %v5238_v28 = vld [vmem:[%s6530_s2] ss:$0 sm:$0xff] }
0x1822   : > { %v5604_v29 = vpop.f32.mrf.mxu1 }
0x18c8   : > { %v4483_v30 = vpop.f32.mrf.mxu0 }
0x18c9   : > { %5613 = vmatmul.mubr.msk.f32.vlgmr.msra.gmra.mxu1 %vm1018_vm3, %v4483_v30 }
0x18ca   : > { %v5609_v55 = vpop.f32.mrf.mxu0  ;;  %5627 = vmatpush3.msra.mxu1 %v4722_v54 }
0x18cb   : > { %5628 = vmatprep.subr.mxu1 %v4721_v26 }
0x18cc   : > { %5629 = vmatpush3.msra.mxu1 %v4721_v26 }
0x18cd   : > { %5630 = vmatprep.subr.mxu1 %v4720_v17 }
0x18ce   : > { %5631 = vmatpush3.msra.mxu1 %v4720_v17 }
0x18cf   : > { %5632 = vmatprep.subr.mxu1 %v4719_v57 }
0x18d0   : > { %5633 = vmatpush3.msra.mxu1 %v4719_v57 }
0x18d1   : > { %5634 = vmatprep.subr.mxu1 %v4718_v19 }
0x18d2   : > { %5635 = vmatpush3.msra.mxu1 %v4718_v19 }
0x18d3   : > { %5636 = vmatprep.subr.mxu1 %v4717_v20 }
0x18d4   : > { %5637 = vmatpush3.msra.mxu1 %v4717_v20 }
0x18d5   : > { %5638 = vmatprep.subr.mxu1 %v4716_v14 }
0x18d6   : > { %5639 = vmatpush3.msra.mxu1 %v4716_v14 }
0x18d7   : > { %5640 = vmatprep.subr.mxu1 %v4715_v12 }
0x18d8   : > { %5641 = vmatpush3.msra.mxu1 %v4715_v12 }
0x1989   : > { %v5614_v31 = vpop.f32.mrf.mxu1 }
0x198a   : > { %v4569_v33 = vadd.f32 %v5614_v31, %v4154_v4  ;;  %v4612_v4 = vrot.slane %v6405_v2, %v4611_v1 }
0x198b   : > { %v4559_v59 = vpop.f32.mrf.mxu1 }
0x198c   : > { %v4578_v34 = vadd.f32 %v5234_v32, %v4569_v33  ;;  %v4568_v35 = vadd.f32 %v4559_v59, %v4153_v6 }
0x198e   : > { %v4577_v36 = vadd.f32 %v5234_v32, %v4568_v35  ;;  %v4580_v37 = vadd.f32 %v4578_v34, %v6208_v53 }
0x1990   : > { %v4586_v38 = vsel %vm923_vm1, %v4580_v37, 0.0  ;;  %v4579_v39 = vadd.f32 %v4577_v36, %v6206_v52 }
0x1991   : > { %4587 = vadd.xlane.f32.xlu0 %v4586_v38 }
0x1992   : > { %v4583_v40 = vsel %vm923_vm1, %v4579_v39, 0.0 }
0x1993   : > { %4584 = vadd.xlane.f32.xlu1 %v4583_v40 }
0x1a1a   : > { %v4588_v42 = vpop.xlane.xlu0 %4587 }
0x1a1b   : > { %v4590_v44 = vmul.f32 0.03125, %v4588_v42 }
0x1a1c   : > { %v4585_v45 = vpop.xlane.xlu1 %4584 }
0x1a1d   : > { %v4592_v61 = vsub.f32 %v4580_v37, %v4590_v44  ;;  %v4589_v46 = vmul.f32 0.03125, %v4585_v45 }
0x1a1f   : > { %v4591_v47 = vsub.f32 %v4579_v39, %v4589_v46  ;;  %v4594_v48 = vmul.f32 %v4592_v61, %v4592_v61 }
0x1a21   : > { %v4598_v53 = vsel %vm923_vm1, %v4594_v48, 0.0  ;;  %v4593_v49 = vmul.f32 %v4591_v47, %v4591_v47 }
0x1a22   : > { %4599 = vadd.xlane.f32.xlu0 %v4598_v53 }
0x1a23   : > { %v4595_v52 = vsel %vm923_vm1, %v4593_v49, 0.0 }
0x1a24   : > { %4596 = vadd.xlane.f32.xlu1 %v4595_v52 }
0x1aab   : > { %v4600_v58 = vpop.xlane.xlu0 %4599 }
0x1aac   : > { %v4602_v60 = vmul.f32 0.03125, %v4600_v58 }
0x1aad   : > { %v4597_v62 = vpop.xlane.xlu1 %4596 }
0x1aae   : > { %v4604_v18 = vadd.f32 1e-05, %v4602_v60  ;;  %v4601_v63 = vmul.f32 0.03125, %v4597_v62 }
0x1ab0   : > { %5746 = vrsqrt.f32 %v4604_v18  ;;  %v4603_v0 = vadd.f32 1e-05, %v4601_v63 }
0x1ab2   : > { %5748 = vrsqrt.f32 %v4603_v0 }
0x1abd   : > { %v5747_v3 = vpop.eup %5746 }
0x1abe   : > { %v4608_v6 = vmul.f32 %v5747_v3, %v4592_v61 }
0x1abf   : > { %v5749_v7 = vpop.eup %5748 }
0x1ac0   : > { %v4607_v13 = vmul.f32 %v5749_v7, %v4591_v47  ;;  %v4614_v8 = vmul.f32 %v4612_v4, %v4608_v6 }
0x1ac2   : > { %v4613_v15 = vmul.f32 %v4612_v4, %v4607_v13  ;;  %v4620_v16 = vadd.f32 %v4618_v11, %v4614_v8 }
0x1ac4   : > { %v4619_v10 = vadd.f32 %v4618_v11, %v4613_v15 }
0x1ac6   : > { %5623 = vmatprep.mubr.msk.f32.mxu0 %vm923_vm1, %v4619_v10 }
0x1ac7   : > { %5624 = vmatmul.mubr.msk.f32.vlgmr.msra.gmra.mxu0 %vm923_vm1, %v4620_v16 }
0x1b87   : > { %v5625_v23 = vpop.f32.mrf.mxu0 }
0x1b88   : > { %v4710_v56 = vadd.f32 %v5625_v23, %v5235_v21 }
0x1b89   : > { %v4704_v9 = vpop.f32.mrf.mxu0 }
0x1b8a   : > { %v4705_v24 = vadd.f32 %v5235_v21, %v4704_v9  ;;  %v4714_v27 = vmax.f32 %v4710_v56, 0.0 }
0x1b8c   : > { %v4713_v25 = vmax.f32 %v4705_v24, 0.0 }
0x1b8e   : > { %5642 = vmatprep.mubr.msk.f32.mxu1 %vm4730_vm5, %v4713_v25 }
0x1b8f   : > { %5643 = vmatmul.mubr.msk.f32.vlgmr.msra.gmra.mxu1 %vm4730_vm5, %v4714_v27 }
0x1c4f   : > { %v5644_v29 = vpop.f32.mrf.mxu1 }
0x1c50   : > { %v4809_v30 = vadd.f32 %v5644_v29, %v5238_v28 }
0x1c51   : > { %v4803_v55 = vpop.f32.mrf.mxu1 }
0x1c52   : > { %v4804_v31 = vadd.f32 %v5238_v28, %v4803_v55  ;;  %v4813_v32 = vadd.f32 %v4809_v30, %v4620_v16 }
0x1c54   : > { %v4817_v33 = vsel %vm923_vm1, %v4813_v32, 0.0  ;;  %v4812_v59 = vadd.f32 %v4804_v31, %v4619_v10 }
0x1c55   : > { %4818 = vadd.xlane.f32.xlu0 %v4817_v33 }
0x1c56   : > { %v4814_v34 = vsel %vm923_vm1, %v4812_v59, 0.0 }
0x1c57   : > { %4815 = vadd.xlane.f32.xlu1 %v4814_v34 }
0x1cde   : > { %v4819_v35 = vpop.xlane.xlu0 %4818 }
0x1cdf   : > { %v4821_v36 = vmul.f32 0.03125, %v4819_v35 }
0x1ce0   : > { %v4816_v37 = vpop.xlane.xlu1 %4815 }
0x1ce1   : > { %v4823_v38 = vsub.f32 %v4813_v32, %v4821_v36  ;;  %v4820_v39 = vmul.f32 0.03125, %v4816_v37 }
0x1ce3   : > { %v4822_v40 = vsub.f32 %v4812_v59, %v4820_v39  ;;  %v4825_v42 = vmul.f32 %v4823_v38, %v4823_v38 }
0x1ce5   : > { %v4829_v44 = vsel %vm923_vm1, %v4825_v42, 0.0  ;;  %v4824_v45 = vmul.f32 %v4822_v40, %v4822_v40 }
0x1ce6   : > { %4830 = vadd.xlane.f32.xlu0 %v4829_v44 }
0x1ce7   : > { %v4826_v61 = vsel %vm923_vm1, %v4824_v45, 0.0 }
0x1ce8   : > { %4827 = vadd.xlane.f32.xlu1 %v4826_v61 }
0x1d6f   : > { %v4831_v46 = vpop.xlane.xlu0 %4830 }
0x1d70   : > { %v4833_v47 = vmul.f32 0.03125, %v4831_v46 }
0x1d71   : > { %v4828_v48 = vpop.xlane.xlu1 %4827 }
0x1d72   : > { %v4835_v53 = vadd.f32 1e-05, %v4833_v47  ;;  %v4832_v49 = vmul.f32 0.03125, %v4828_v48 }
0x1d74   : > { %5750 = vrsqrt.f32 %v4835_v53  ;;  %v4834_v52 = vadd.f32 1e-05, %v4832_v49 }
0x1d76   : > { %5752 = vrsqrt.f32 %v4834_v52 }
0x1d81   : > { %v5751_v51 = vpop.eup %5750 }
0x1d82   : > { %v4839_v54 = vmul.f32 %v5751_v51, %v4823_v38 }
0x1d83   : > { %v5753_v26 = vpop.eup %5752 }
0x1d84   : > { %v4845_v17 = vmul.f32 %v4843_v50, %v4839_v54  ;;  %v4838_v57 = vmul.f32 %v5753_v26, %v4822_v40 }
0x1d86   : > { %v4851_v58 = vadd.f32 %v4849_v43, %v4845_v17  ;;  %v4844_v60 = vmul.f32 %v4843_v50, %v4838_v57  ;;  %4857 = sbr.rel (%p5241_p5) target bundleno = 7770 (0x1e5a), region = 112 }
0x1d88   : > { %4853 = vst.msk [vmem:[#allocation2 + $0x8] sm:$0xff] %vm923_vm1, %v4851_v58  ;;  %v4850_v62 = vadd.f32 %v4849_v43, %v4844_v60 }
0x1d8a   : > { %4852 = vst.msk [vmem:[#allocation2] sm:$0xff] %vm923_vm1, %v4850_v62 }
0x1d8b   : > { %v4861_v22 = vld [vmem:[%s6532_s25 + $0x18] sm:$0xff]  ;;  %v4860_v18 = vld [vmem:[%s6532_s25 + $0x10] sm:$0xff]  ;;  %5653 = vmatprep.mubr.msk.f32.mxu0 %vm923_vm1, %v4850_v62  ;;  %v4859_v63 = vld [vmem:[%s6532_s25 + $0x8] sm:$0xff] }
0x1d8c   : > { %5645 = vmatprep.subr.mxu0 %v4861_v22  ;;  %v4858_v0 = vld [vmem:[%s6532_s25] sm:$0xff] }
0x1d8d   : > { %5646 = vmatpush3.msra.mxu0 %v4861_v22  ;;  %v5242_v1 = vld [vmem:[%s6533_s21] ss:$0 sm:$0xff] }
0x1d8e   : > { %5647 = vmatprep.subr.mxu0 %v4860_v18 }
0x1d8f   : > { %5648 = vmatpush3.msra.mxu0 %v4860_v18 }
0x1d90   : > { %5649 = vmatprep.subr.mxu0 %v4859_v63 }
0x1d91   : > { %5650 = vmatpush3.msra.mxu0 %v4859_v63 }
0x1d92   : > { %5651 = vmatprep.subr.mxu0 %v4858_v0 }
0x1d93   : > { %5652 = vmatpush3.msra.mxu0 %v4858_v0 }
0x1d94   : > { %5654 = vmatmul.mubr.msk.f32.vlgmr.msra.gmra.mxu0 %vm923_vm1, %v4851_v58 }
0x1e54   : > { %v5655_v2 = vpop.f32.mrf.mxu0 }
0x1e55   : > { %v4947_v3 = vadd.f32 %v5655_v2, %v5242_v1 }
0x1e56   : > { %v4941_v4 = vpop.f32.mrf.mxu0 }
0x1e57   : > { %4951 = vst [vmem:[%s6534_s28 + $0x8] sm:$0xff] %v4947_v3  ;;  %v4942_v5 = vadd.f32 %v5242_v1, %v4941_v4 }
0x1e59   : > { %4950 = vst [vmem:[%s6534_s28] sm:$0xff] %v4942_v5 }
0x1e5a PF: > { %s6535_s30 = sld [smem:[#allocation3_spill]] }
0x1e60   : > { %s31_s2 = sadd.s32 1, %s6535_s30  }
0x1e61   : > { %p28_p6 = scmp.ge.s32.totalorder %s31_s2, 4  }
0x1e63   :  { %30 = sbr.rel (!%p28_p6) target bundleno = 16 (0x10), region = 183 }

</bundles_post_ra>
